<compile_context>
chip_gen: v5e
topology: v5e:2x2
jax: 0.10.0
libtpu: 0.0.40
codegen_flags: <defaults>
</compile_context>

<pallas_src>
import jax
import jax.numpy as jnp
from jax.experimental import pallas as pl
from jax.experimental.pallas import tpu as pltpu


def _round_up(x, m):
    return (x + m - 1) // m * m


def _pad_gate_cols(w, h, hp):
    """Zero-pad each of the 4 gate blocks of a (..., 4*h) matrix to (..., 4*hp)."""
    if hp == h:
        return w
    lead = w.shape[:-1]
    w4 = w.reshape(*lead, 4, h)
    w4 = jnp.pad(w4, [(0, 0)] * len(lead) + [(0, 0), (0, hp - h)])
    return w4.reshape(*lead, 4 * hp)


def _lstm_recurrence_kernel(pg_ref, w_hh_ref, h_out_ref, h_ref, c_ref):
    """One grid step = T_BLK LSTM timesteps for one batch block.

    pg_ref     : (T_BLK, B_BLK, 4*Hp) bf16  pre-computed x @ W_ih + b tile
    w_hh_ref   : (Hp, 4*Hp)           bf16  hidden->gates weights (resident)
    h_out_ref  : (B_BLK, Hp)          f32   final hidden state (last time block)
    h_ref,c_ref: (B_BLK, Hp)          f32   VMEM scratch carrying the state
    """
    t_blk = pl.program_id(1)
    hp = h_ref.shape[-1]

    @pl.when(t_blk == 0)
    def _():
        h_ref[...] = jnp.zeros_like(h_ref)
        c_ref[...] = jnp.zeros_like(c_ref)

    def step(t, carry):
        h, c = carry
        gates = pg_ref[t].astype(jnp.float32) + jnp.dot(
            h.astype(jnp.bfloat16), w_hh_ref[...],
            preferred_element_type=jnp.float32)               # (B_BLK, 4*Hp)
        # PyTorch gate order: i, f, g, o -- each slice is 128-lane aligned.
        i = jax.nn.sigmoid(gates[:, 0 * hp:1 * hp])
        f = jax.nn.sigmoid(gates[:, 1 * hp:2 * hp])
        g = jnp.tanh(gates[:, 2 * hp:3 * hp])
        o = jax.nn.sigmoid(gates[:, 3 * hp:4 * hp])
        c = f * c + i * g
        h = o * jnp.tanh(c)
        return h, c

    h_new, c_new = jax.lax.fori_loop(
        0, pg_ref.shape[0], step, (h_ref[...], c_ref[...]), unroll=True)
    h_ref[...] = h_new
    c_ref[...] = c_new

    @pl.when(t_blk == pl.num_programs(1) - 1)
    def _():
        h_out_ref[...] = h_new


def comments_classifier_forward(input_ids, params, *, t_block=8, b_block=8):
    """Forward pass equivalent to CommentsClassifier.forward.

    input_ids : (B, T) int32
    returns   : (B, num_labels) float32
    """
    emb = params["embedding"]          # (V, E)
    w_ih = params["w_ih"]              # (E, 4H)
    w_hh = params["w_hh"]              # (H, 4H)
    b = params["b"]                    # (1, 4H)  == b_ih + b_hh
    w_cls = params["w_cls"]            # (H, L)
    b_cls = params["b_cls"]            # (1, L)

    B, T = input_ids.shape
    E = emb.shape[1]
    H = w_hh.shape[0]

    hp = _round_up(H, 128)             # lane-aligned hidden size
    bp = _round_up(B, b_block)         # sublane-aligned batch
    t_block = min(t_block, T)
    tp = _round_up(T, t_block)

    # Per-gate zero padding of the weights to Hp lanes (exact: padded hidden
    # units receive 0 pre-activation and therefore stay at h = c = 0 forever).
    w_ih_p = _pad_gate_cols(w_ih, H, hp)                      # (E, 4Hp)
    b_p = _pad_gate_cols(b, H, hp)                            # (1, 4Hp)
    w_hh_p = _pad_gate_cols(w_hh, H, hp)                      # (H, 4Hp)
    w_hh_p = jnp.pad(w_hh_p, ((0, hp - H), (0, 0)))           # (Hp, 4Hp)

    # Time-major embedding gather (no (B,T,E)->(T,B,E) activation transpose).
    x_tbe = jnp.take(emb, input_ids.T, axis=0)                # (T, B, E)

    # Hoisted input projection: one large, fully pipelined matmul outside the
    # serial recurrence (bf16 operands, f32 accumulation).
    pre = jnp.dot(x_tbe.reshape(T * B, E).astype(jnp.bfloat16),
                  w_ih_p.astype(jnp.bfloat16),
                  preferred_element_type=jnp.float32) + b_p
    pre = pre.reshape(T, B, 4 * hp)
    # Pad batch (trailing) and time (LEADING: zero pre-gates leave the zero
    # initial state exactly unchanged) to the block grid.
    pre = jnp.pad(pre, ((tp - T, 0), (0, bp - B), (0, 0)))
    pre_gates = pre.astype(jnp.bfloat16)                      # (Tp, Bp, 4Hp)

    grid = (bp // b_block, tp // t_block)
    grid_spec = pltpu.PrefetchScalarGridSpec(
        num_scalar_prefetch=0,
        grid=grid,
        in_specs=[
            pl.BlockSpec((t_block, b_block, 4 * hp),
                         lambda bb, tb: (tb, bb, 0)),          # pre-gates tile
            pl.BlockSpec((hp, 4 * hp), lambda bb, tb: (0, 0)), # W_hh resident
        ],
        out_specs=pl.BlockSpec((b_block, hp), lambda bb, tb: (bb, 0)),
        scratch_shapes=[
            pltpu.VMEM((b_block, hp), jnp.float32),            # h state
            pltpu.VMEM((b_block, hp), jnp.float32),            # c state
        ],
    )

    h_last = pl.pallas_call(
        _lstm_recurrence_kernel,
        out_shape=jax.ShapeDtypeStruct((bp, hp), jnp.float32),
        grid_spec=grid_spec,
        compiler_params=pltpu.CompilerParams(
            # Batch blocks are independent (megacore-parallel on v7x);
            # the time axis carries the recurrence -> "arbitrary".
            dimension_semantics=("parallel", "arbitrary")),
    )(pre_gates, w_hh_p.astype(jnp.bfloat16))

    # Tiny classifier runs once per call -> keep it in XLA on the unpadded slice.
    return h_last[:B, :H] @ w_cls + b_cls


def init_params(key, vocab_size, embedding_dim, hidden_size, num_labels):
    """Deterministic synthetic parameters with the same shapes as the nn.Module."""
    k = jax.random.split(key, 7)
    scale = 0.1
    emb = scale * jax.random.normal(k[0], (vocab_size, embedding_dim), jnp.float32)
    emb = emb.at[0].set(0.0)                                  # padding_idx=0
    # PyTorch stores weight_ih as (4H, E) and weight_hh as (4H, H); we pre-transpose.
    w_ih = scale * jax.random.normal(k[1], (embedding_dim, 4 * hidden_size), jnp.float32)
    w_hh = scale * jax.random.normal(k[2], (hidden_size, 4 * hidden_size), jnp.float32)
    b_ih = scale * jax.random.normal(k[3], (4 * hidden_size,), jnp.float32)
    b_hh = scale * jax.random.normal(k[4], (4 * hidden_size,), jnp.float32)
    w_cls = scale * jax.random.normal(k[5], (hidden_size, num_labels), jnp.float32)
    b_cls = scale * jax.random.normal(k[6], (num_labels,), jnp.float32)
    return {
        "embedding": emb,
        "w_ih": w_ih,
        "w_hh": w_hh,
        "b": (b_ih + b_hh).reshape(1, -1),
        "w_cls": w_cls,
        "b_cls": b_cls.reshape(1, -1),
    }


def _reference_forward(input_ids, params):
    """Pure-JAX f32 reference (lax.scan LSTM, HIGHEST-precision matmuls)."""
    emb = jnp.take(params["embedding"], input_ids, axis=0)    # (B, T, E)
    B = emb.shape[0]
    H = params["w_hh"].shape[0]
    prec = jax.lax.Precision.HIGHEST

    def step(carry, x_t):
        h, c = carry
        gates = (jnp.dot(x_t, params["w_ih"], precision=prec)
                 + jnp.dot(h, params["w_hh"], precision=prec)
                 + params["b"])
        i, f, g, o = jnp.split(gates, 4, axis=-1)
        i, f, o = jax.nn.sigmoid(i), jax.nn.sigmoid(f), jax.nn.sigmoid(o)
        g = jnp.tanh(g)
        c = f * c + i * g
        h = o * jnp.tanh(c)
        return (h, c), None

    h0 = jnp.zeros((B, H), jnp.float32)
    c0 = jnp.zeros((B, H), jnp.float32)
    (h_last, _), _ = jax.lax.scan(step, (h0, c0), jnp.swapaxes(emb, 0, 1))
    return jnp.dot(h_last, params["w_cls"], precision=prec) + params["b_cls"]


if __name__ == "__main__":
    vocab_size, embedding_dim, hidden_size, num_labels = 100, 16, 32, 3
    batch, seq = 4, 8

    key = jax.random.PRNGKey(0)
    k_params, k_ids = jax.random.split(key)
    params = init_params(k_params, vocab_size, embedding_dim, hidden_size, num_labels)

    input_ids = jax.random.randint(k_ids, (batch, seq), 0, vocab_size, dtype=jnp.int32)

    forward = jax.jit(comments_classifier_forward)
    logits = jax.block_until_ready(forward(input_ids, params))

    ref = jax.block_until_ready(_reference_forward(input_ids, params))
    assert logits.shape == (batch, num_labels)
    # bf16 MXU operands (f32 accumulation) in the kernel vs. an f32 HIGHEST
    # reference -> allow bf16-level noise.
    assert jnp.allclose(logits, ref, atol=1e-2, rtol=1e-2), \
        f"mismatch vs JAX reference, max abs diff {jnp.max(jnp.abs(logits - ref))}"

    print("KERNEL_OK")
</pallas_src>

<mosaic_0001>
module attributes {stable_mosaic.version = 11 : i64} {
  func.func @_lstm_recurrence_kernel(%arg0: i32, %arg1: i32, %arg2: memref<8x8x512xbf16, #tpu.memory_space<vmem>>, %arg3: memref<128x512xbf16, #tpu.memory_space<vmem>>, %arg4: memref<8x128xf32, #tpu.memory_space<vmem>>, %arg5: memref<8x128xf32, #tpu.memory_space<vmem>>, %arg6: memref<8x128xf32, #tpu.memory_space<vmem>>) attributes {dimension_semantics = [#tpu.dimension_semantics<parallel>, #tpu.dimension_semantics<arbitrary>], iteration_bounds = array<i64: 1, 1>, scalar_prefetch = 0 : i64, scratch_operands = 2 : i64, tpu.core_type = #tpu.core_type<tc>, window_params = [{transform_indices = @transform_0, window_bounds = array<i64: 8, 8, 512>}, {pipeline_mode = #tpu.pipeline_mode<synchronous>, transform_indices = @transform_1, window_bounds = array<i64: 128, 512>}, {transform_indices = @transform_2, window_bounds = array<i64: 8, 128>}]} {
    %c0_i32 = arith.constant 0 : i32
    %0 = arith.cmpi eq, %arg1, %c0_i32 : i32
    %1 = arith.extui %0 : i1 to i32
    %c0_i32_0 = arith.constant 0 : i32
    %2 = arith.cmpi ne, %1, %c0_i32_0 : i32
    scf.if %2 {
      %cst_74 = arith.constant 0.000000e+00 : f32
      %274 = vector.broadcast %cst_74 : f32 to vector<8x128xf32>
      %c0_75 = arith.constant 0 : index
      %c0_76 = arith.constant 0 : index
      %275 = vector.load %arg5[%c0_75, %c0_76] : memref<8x128xf32, #tpu.memory_space<vmem>>, vector<8x128xf32>
      tpu.vector_store %arg5[%c0_75, %c0_76], %274 {strides = array<i32>} : memref<8x128xf32, #tpu.memory_space<vmem>>, vector<8x128xf32>,
      %cst_77 = arith.constant 0.000000e+00 : f32
      %276 = vector.broadcast %cst_77 : f32 to vector<8x128xf32>
      %c0_78 = arith.constant 0 : index
      %c0_79 = arith.constant 0 : index
      %277 = vector.load %arg6[%c0_78, %c0_79] : memref<8x128xf32, #tpu.memory_space<vmem>>, vector<8x128xf32>
      tpu.vector_store %arg6[%c0_78, %c0_79], %276 {strides = array<i32>} : memref<8x128xf32, #tpu.memory_space<vmem>>, vector<8x128xf32>,
    } else {
    }
    %c0 = arith.constant 0 : index
    %c0_1 = arith.constant 0 : index
    %3 = vector.load %arg5[%c0, %c0_1] : memref<8x128xf32, #tpu.memory_space<vmem>>, vector<8x128xf32>
    %c0_2 = arith.constant 0 : index
    %c0_3 = arith.constant 0 : index
    %4 = vector.load %arg6[%c0_2, %c0_3] : memref<8x128xf32, #tpu.memory_space<vmem>>, vector<8x128xf32>
    %c0_i32_4 = arith.constant 0 : i32
    %5 = arith.index_cast %c0_i32_4 : i32 to index
    %c0_5 = arith.constant 0 : index
    %c0_6 = arith.constant 0 : index
    %6 = vector.load %arg2[%5, %c0_5, %c0_6] : memref<8x8x512xbf16, #tpu.memory_space<vmem>>, vector<1x8x512xbf16>
    %7 = vector.shape_cast %6 : vector<1x8x512xbf16> to vector<8x512xbf16>
    %8 = arith.extf %7 : vector<8x512xbf16> to vector<8x512xf32>
    %9 = arith.truncf %3 : vector<8x128xf32> to vector<8x128xbf16>
    %c0_7 = arith.constant 0 : index
    %c0_8 = arith.constant 0 : index
    %10 = vector.load %arg3[%c0_7, %c0_8] : memref<128x512xbf16, #tpu.memory_space<vmem>>, vector<128x512xbf16>
    %cst = arith.constant dense<0.000000e+00> : vector<8x512xf32>
    %11 = tpu.matmul %9, %10, %cst {dimension_numbers = #tpu.dot_dimension_numbers<[1], [0], [0], [1], [0, 0, 1, 1], [], []>} : vector<8x128xbf16>, vector<128x512xbf16>, vector<8x512xf32> -> vector<8x512xf32>
    %12 = arith.addf %8, %11 : vector<8x512xf32>
    %13 = vector.extract_strided_slice %12 {offsets = [0, 0], sizes = [8, 128], strides = [1, 1]} : vector<8x512xf32> to vector<8x128xf32>
    %14 = arith.negf %13 : vector<8x128xf32>
    %15 = math.exp %14 : vector<8x128xf32>
    %cst_9 = arith.constant 1.000000e+00 : f32
    %16 = vector.broadcast %cst_9 : f32 to vector<8x128xf32>
    %17 = arith.addf %16, %15 : vector<8x128xf32>
    %18 = arith.divf %16, %17 : vector<8x128xf32>
    %19 = vector.extract_strided_slice %12 {offsets = [0, 128], sizes = [8, 128], strides = [1, 1]} : vector<8x512xf32> to vector<8x128xf32>
    %20 = arith.negf %19 : vector<8x128xf32>
    %21 = math.exp %20 : vector<8x128xf32>
    %cst_10 = arith.constant 1.000000e+00 : f32
    %22 = vector.broadcast %cst_10 : f32 to vector<8x128xf32>
    %23 = arith.addf %22, %21 : vector<8x128xf32>
    %24 = arith.divf %22, %23 : vector<8x128xf32>
    %25 = vector.extract_strided_slice %12 {offsets = [0, 256], sizes = [8, 128], strides = [1, 1]} : vector<8x512xf32> to vector<8x128xf32>
    %26 = math.tanh %25 : vector<8x128xf32>
    %27 = vector.extract_strided_slice %12 {offsets = [0, 384], sizes = [8, 128], strides = [1, 1]} : vector<8x512xf32> to vector<8x128xf32>
    %28 = arith.negf %27 : vector<8x128xf32>
    %29 = math.exp %28 : vector<8x128xf32>
    %cst_11 = arith.constant 1.000000e+00 : f32
    %30 = vector.broadcast %cst_11 : f32 to vector<8x128xf32>
    %31 = arith.addf %30, %29 : vector<8x128xf32>
    %32 = arith.divf %30, %31 : vector<8x128xf32>
    %33 = arith.mulf %24, %4 : vector<8x128xf32>
    %34 = arith.mulf %18, %26 : vector<8x128xf32>
    %35 = arith.addf %33, %34 : vector<8x128xf32>
    %36 = math.tanh %35 : vector<8x128xf32>
    %37 = arith.mulf %32, %36 : vector<8x128xf32>
    %c1_i32 = arith.constant 1 : i32
    %38 = arith.index_cast %c1_i32 : i32 to index
    %c0_12 = arith.constant 0 : index
    %c0_13 = arith.constant 0 : index
    %39 = vector.load %arg2[%38, %c0_12, %c0_13] : memref<8x8x512xbf16, #tpu.memory_space<vmem>>, vector<1x8x512xbf16>
    %40 = vector.shape_cast %39 : vector<1x8x512xbf16> to vector<8x512xbf16>
    %41 = arith.extf %40 : vector<8x512xbf16> to vector<8x512xf32>
    %42 = arith.truncf %37 : vector<8x128xf32> to vector<8x128xbf16>
    %c0_14 = arith.constant 0 : index
    %c0_15 = arith.constant 0 : index
    %43 = vector.load %arg3[%c0_14, %c0_15] : memref<128x512xbf16, #tpu.memory_space<vmem>>, vector<128x512xbf16>
    %cst_16 = arith.constant dense<0.000000e+00> : vector<8x512xf32>
    %44 = tpu.matmul %42, %43, %cst_16 {dimension_numbers = #tpu.dot_dimension_numbers<[1], [0], [0], [1], [0, 0, 1, 1], [], []>} : vector<8x128xbf16>, vector<128x512xbf16>, vector<8x512xf32> -> vector<8x512xf32>
    %45 = arith.addf %41, %44 : vector<8x512xf32>
    %46 = vector.extract_strided_slice %45 {offsets = [0, 0], sizes = [8, 128], strides = [1, 1]} : vector<8x512xf32> to vector<8x128xf32>
    %47 = arith.negf %46 : vector<8x128xf32>
    %48 = math.exp %47 : vector<8x128xf32>
    %cst_17 = arith.constant 1.000000e+00 : f32
    %49 = vector.broadcast %cst_17 : f32 to vector<8x128xf32>
    %50 = arith.addf %49, %48 : vector<8x128xf32>
    %51 = arith.divf %49, %50 : vector<8x128xf32>
    %52 = vector.extract_strided_slice %45 {offsets = [0, 128], sizes = [8, 128], strides = [1, 1]} : vector<8x512xf32> to vector<8x128xf32>
    %53 = arith.negf %52 : vector<8x128xf32>
    %54 = math.exp %53 : vector<8x128xf32>
    %cst_18 = arith.constant 1.000000e+00 : f32
    %55 = vector.broadcast %cst_18 : f32 to vector<8x128xf32>
    %56 = arith.addf %55, %54 : vector<8x128xf32>
    %57 = arith.divf %55, %56 : vector<8x128xf32>
    %58 = vector.extract_strided_slice %45 {offsets = [0, 256], sizes = [8, 128], strides = [1, 1]} : vector<8x512xf32> to vector<8x128xf32>
    %59 = math.tanh %58 : vector<8x128xf32>
    %60 = vector.extract_strided_slice %45 {offsets = [0, 384], sizes = [8, 128], strides = [1, 1]} : vector<8x512xf32> to vector<8x128xf32>
    %61 = arith.negf %60 : vector<8x128xf32>
    %62 = math.exp %61 : vector<8x128xf32>
    %cst_19 = arith.constant 1.000000e+00 : f32
    %63 = vector.broadcast %cst_19 : f32 to vector<8x128xf32>
    %64 = arith.addf %63, %62 : vector<8x128xf32>
    %65 = arith.divf %63, %64 : vector<8x128xf32>
    %66 = arith.mulf %57, %35 : vector<8x128xf32>
    %67 = arith.mulf %51, %59 : vector<8x128xf32>
    %68 = arith.addf %66, %67 : vector<8x128xf32>
    %69 = math.tanh %68 : vector<8x128xf32>
    %70 = arith.mulf %65, %69 : vector<8x128xf32>
    %c2_i32 = arith.constant 2 : i32
    %71 = arith.index_cast %c2_i32 : i32 to index
    %c0_20 = arith.constant 0 : index
    %c0_21 = arith.constant 0 : index
    %72 = vector.load %arg2[%71, %c0_20, %c0_21] : memref<8x8x512xbf16, #tpu.memory_space<vmem>>, vector<1x8x512xbf16>
    %73 = vector.shape_cast %72 : vector<1x8x512xbf16> to vector<8x512xbf16>
    %74 = arith.extf %73 : vector<8x512xbf16> to vector<8x512xf32>
    %75 = arith.truncf %70 : vector<8x128xf32> to vector<8x128xbf16>
    %c0_22 = arith.constant 0 : index
    %c0_23 = arith.constant 0 : index
    %76 = vector.load %arg3[%c0_22, %c0_23] : memref<128x512xbf16, #tpu.memory_space<vmem>>, vector<128x512xbf16>
    %cst_24 = arith.constant dense<0.000000e+00> : vector<8x512xf32>
    %77 = tpu.matmul %75, %76, %cst_24 {dimension_numbers = #tpu.dot_dimension_numbers<[1], [0], [0], [1], [0, 0, 1, 1], [], []>} : vector<8x128xbf16>, vector<128x512xbf16>, vector<8x512xf32> -> vector<8x512xf32>
    %78 = arith.addf %74, %77 : vector<8x512xf32>
    %79 = vector.extract_strided_slice %78 {offsets = [0, 0], sizes = [8, 128], strides = [1, 1]} : vector<8x512xf32> to vector<8x128xf32>
    %80 = arith.negf %79 : vector<8x128xf32>
    %81 = math.exp %80 : vector<8x128xf32>
    %cst_25 = arith.constant 1.000000e+00 : f32
    %82 = vector.broadcast %cst_25 : f32 to vector<8x128xf32>
    %83 = arith.addf %82, %81 : vector<8x128xf32>
    %84 = arith.divf %82, %83 : vector<8x128xf32>
    %85 = vector.extract_strided_slice %78 {offsets = [0, 128], sizes = [8, 128], strides = [1, 1]} : vector<8x512xf32> to vector<8x128xf32>
    %86 = arith.negf %85 : vector<8x128xf32>
    %87 = math.exp %86 : vector<8x128xf32>
    %cst_26 = arith.constant 1.000000e+00 : f32
    %88 = vector.broadcast %cst_26 : f32 to vector<8x128xf32>
    %89 = arith.addf %88, %87 : vector<8x128xf32>
    %90 = arith.divf %88, %89 : vector<8x128xf32>
    %91 = vector.extract_strided_slice %78 {offsets = [0, 256], sizes = [8, 128], strides = [1, 1]} : vector<8x512xf32> to vector<8x128xf32>
    %92 = math.tanh %91 : vector<8x128xf32>
    %93 = vector.extract_strided_slice %78 {offsets = [0, 384], sizes = [8, 128], strides = [1, 1]} : vector<8x512xf32> to vector<8x128xf32>
    %94 = arith.negf %93 : vector<8x128xf32>
    %95 = math.exp %94 : vector<8x128xf32>
    %cst_27 = arith.constant 1.000000e+00 : f32
    %96 = vector.broadcast %cst_27 : f32 to vector<8x128xf32>
    %97 = arith.addf %96, %95 : vector<8x128xf32>
    %98 = arith.divf %96, %97 : vector<8x128xf32>
    %99 = arith.mulf %90, %68 : vector<8x128xf32>
    %100 = arith.mulf %84, %92 : vector<8x128xf32>
    %101 = arith.addf %99, %100 : vector<8x128xf32>
    %102 = math.tanh %101 : vector<8x128xf32>
    %103 = arith.mulf %98, %102 : vector<8x128xf32>
    %c3_i32 = arith.constant 3 : i32
    %104 = arith.index_cast %c3_i32 : i32 to index
    %c0_28 = arith.constant 0 : index
    %c0_29 = arith.constant 0 : index
    %105 = vector.load %arg2[%104, %c0_28, %c0_29] : memref<8x8x512xbf16, #tpu.memory_space<vmem>>, vector<1x8x512xbf16>
    %106 = vector.shape_cast %105 : vector<1x8x512xbf16> to vector<8x512xbf16>
    %107 = arith.extf %106 : vector<8x512xbf16> to vector<8x512xf32>
    %108 = arith.truncf %103 : vector<8x128xf32> to vector<8x128xbf16>
    %c0_30 = arith.constant 0 : index
    %c0_31 = arith.constant 0 : index
    %109 = vector.load %arg3[%c0_30, %c0_31] : memref<128x512xbf16, #tpu.memory_space<vmem>>, vector<128x512xbf16>
    %cst_32 = arith.constant dense<0.000000e+00> : vector<8x512xf32>
    %110 = tpu.matmul %108, %109, %cst_32 {dimension_numbers = #tpu.dot_dimension_numbers<[1], [0], [0], [1], [0, 0, 1, 1], [], []>} : vector<8x128xbf16>, vector<128x512xbf16>, vector<8x512xf32> -> vector<8x512xf32>
    %111 = arith.addf %107, %110 : vector<8x512xf32>
    %112 = vector.extract_strided_slice %111 {offsets = [0, 0], sizes = [8, 128], strides = [1, 1]} : vector<8x512xf32> to vector<8x128xf32>
    %113 = arith.negf %112 : vector<8x128xf32>
    %114 = math.exp %113 : vector<8x128xf32>
    %cst_33 = arith.constant 1.000000e+00 : f32
    %115 = vector.broadcast %cst_33 : f32 to vector<8x128xf32>
    %116 = arith.addf %115, %114 : vector<8x128xf32>
    %117 = arith.divf %115, %116 : vector<8x128xf32>
    %118 = vector.extract_strided_slice %111 {offsets = [0, 128], sizes = [8, 128], strides = [1, 1]} : vector<8x512xf32> to vector<8x128xf32>
    %119 = arith.negf %118 : vector<8x128xf32>
    %120 = math.exp %119 : vector<8x128xf32>
    %cst_34 = arith.constant 1.000000e+00 : f32
    %121 = vector.broadcast %cst_34 : f32 to vector<8x128xf32>
    %122 = arith.addf %121, %120 : vector<8x128xf32>
    %123 = arith.divf %121, %122 : vector<8x128xf32>
    %124 = vector.extract_strided_slice %111 {offsets = [0, 256], sizes = [8, 128], strides = [1, 1]} : vector<8x512xf32> to vector<8x128xf32>
    %125 = math.tanh %124 : vector<8x128xf32>
    %126 = vector.extract_strided_slice %111 {offsets = [0, 384], sizes = [8, 128], strides = [1, 1]} : vector<8x512xf32> to vector<8x128xf32>
    %127 = arith.negf %126 : vector<8x128xf32>
    %128 = math.exp %127 : vector<8x128xf32>
    %cst_35 = arith.constant 1.000000e+00 : f32
    %129 = vector.broadcast %cst_35 : f32 to vector<8x128xf32>
    %130 = arith.addf %129, %128 : vector<8x128xf32>
    %131 = arith.divf %129, %130 : vector<8x128xf32>
    %132 = arith.mulf %123, %101 : vector<8x128xf32>
    %133 = arith.mulf %117, %125 : vector<8x128xf32>
    %134 = arith.addf %132, %133 : vector<8x128xf32>
    %135 = math.tanh %134 : vector<8x128xf32>
    %136 = arith.mulf %131, %135 : vector<8x128xf32>
    %c4_i32 = arith.constant 4 : i32
    %137 = arith.index_cast %c4_i32 : i32 to index
    %c0_36 = arith.constant 0 : index
    %c0_37 = arith.constant 0 : index
    %138 = vector.load %arg2[%137, %c0_36, %c0_37] : memref<8x8x512xbf16, #tpu.memory_space<vmem>>, vector<1x8x512xbf16>
    %139 = vector.shape_cast %138 : vector<1x8x512xbf16> to vector<8x512xbf16>
    %140 = arith.extf %139 : vector<8x512xbf16> to vector<8x512xf32>
    %141 = arith.truncf %136 : vector<8x128xf32> to vector<8x128xbf16>
    %c0_38 = arith.constant 0 : index
    %c0_39 = arith.constant 0 : index
    %142 = vector.load %arg3[%c0_38, %c0_39] : memref<128x512xbf16, #tpu.memory_space<vmem>>, vector<128x512xbf16>
    %cst_40 = arith.constant dense<0.000000e+00> : vector<8x512xf32>
    %143 = tpu.matmul %141, %142, %cst_40 {dimension_numbers = #tpu.dot_dimension_numbers<[1], [0], [0], [1], [0, 0, 1, 1], [], []>} : vector<8x128xbf16>, vector<128x512xbf16>, vector<8x512xf32> -> vector<8x512xf32>
    %144 = arith.addf %140, %143 : vector<8x512xf32>
    %145 = vector.extract_strided_slice %144 {offsets = [0, 0], sizes = [8, 128], strides = [1, 1]} : vector<8x512xf32> to vector<8x128xf32>
    %146 = arith.negf %145 : vector<8x128xf32>
    %147 = math.exp %146 : vector<8x128xf32>
    %cst_41 = arith.constant 1.000000e+00 : f32
    %148 = vector.broadcast %cst_41 : f32 to vector<8x128xf32>
    %149 = arith.addf %148, %147 : vector<8x128xf32>
    %150 = arith.divf %148, %149 : vector<8x128xf32>
    %151 = vector.extract_strided_slice %144 {offsets = [0, 128], sizes = [8, 128], strides = [1, 1]} : vector<8x512xf32> to vector<8x128xf32>
    %152 = arith.negf %151 : vector<8x128xf32>
    %153 = math.exp %152 : vector<8x128xf32>
    %cst_42 = arith.constant 1.000000e+00 : f32
    %154 = vector.broadcast %cst_42 : f32 to vector<8x128xf32>
    %155 = arith.addf %154, %153 : vector<8x128xf32>
    %156 = arith.divf %154, %155 : vector<8x128xf32>
    %157 = vector.extract_strided_slice %144 {offsets = [0, 256], sizes = [8, 128], strides = [1, 1]} : vector<8x512xf32> to vector<8x128xf32>
    %158 = math.tanh %157 : vector<8x128xf32>
    %159 = vector.extract_strided_slice %144 {offsets = [0, 384], sizes = [8, 128], strides = [1, 1]} : vector<8x512xf32> to vector<8x128xf32>
    %160 = arith.negf %159 : vector<8x128xf32>
    %161 = math.exp %160 : vector<8x128xf32>
    %cst_43 = arith.constant 1.000000e+00 : f32
    %162 = vector.broadcast %cst_43 : f32 to vector<8x128xf32>
    %163 = arith.addf %162, %161 : vector<8x128xf32>
    %164 = arith.divf %162, %163 : vector<8x128xf32>
    %165 = arith.mulf %156, %134 : vector<8x128xf32>
    %166 = arith.mulf %150, %158 : vector<8x128xf32>
    %167 = arith.addf %165, %166 : vector<8x128xf32>
    %168 = math.tanh %167 : vector<8x128xf32>
    %169 = arith.mulf %164, %168 : vector<8x128xf32>
    %c5_i32 = arith.constant 5 : i32
    %170 = arith.index_cast %c5_i32 : i32 to index
    %c0_44 = arith.constant 0 : index
    %c0_45 = arith.constant 0 : index
    %171 = vector.load %arg2[%170, %c0_44, %c0_45] : memref<8x8x512xbf16, #tpu.memory_space<vmem>>, vector<1x8x512xbf16>
    %172 = vector.shape_cast %171 : vector<1x8x512xbf16> to vector<8x512xbf16>
    %173 = arith.extf %172 : vector<8x512xbf16> to vector<8x512xf32>
    %174 = arith.truncf %169 : vector<8x128xf32> to vector<8x128xbf16>
    %c0_46 = arith.constant 0 : index
    %c0_47 = arith.constant 0 : index
    %175 = vector.load %arg3[%c0_46, %c0_47] : memref<128x512xbf16, #tpu.memory_space<vmem>>, vector<128x512xbf16>
    %cst_48 = arith.constant dense<0.000000e+00> : vector<8x512xf32>
    %176 = tpu.matmul %174, %175, %cst_48 {dimension_numbers = #tpu.dot_dimension_numbers<[1], [0], [0], [1], [0, 0, 1, 1], [], []>} : vector<8x128xbf16>, vector<128x512xbf16>, vector<8x512xf32> -> vector<8x512xf32>
    %177 = arith.addf %173, %176 : vector<8x512xf32>
    %178 = vector.extract_strided_slice %177 {offsets = [0, 0], sizes = [8, 128], strides = [1, 1]} : vector<8x512xf32> to vector<8x128xf32>
    %179 = arith.negf %178 : vector<8x128xf32>
    %180 = math.exp %179 : vector<8x128xf32>
    %cst_49 = arith.constant 1.000000e+00 : f32
    %181 = vector.broadcast %cst_49 : f32 to vector<8x128xf32>
    %182 = arith.addf %181, %180 : vector<8x128xf32>
    %183 = arith.divf %181, %182 : vector<8x128xf32>
    %184 = vector.extract_strided_slice %177 {offsets = [0, 128], sizes = [8, 128], strides = [1, 1]} : vector<8x512xf32> to vector<8x128xf32>
    %185 = arith.negf %184 : vector<8x128xf32>
    %186 = math.exp %185 : vector<8x128xf32>
    %cst_50 = arith.constant 1.000000e+00 : f32
    %187 = vector.broadcast %cst_50 : f32 to vector<8x128xf32>
    %188 = arith.addf %187, %186 : vector<8x128xf32>
    %189 = arith.divf %187, %188 : vector<8x128xf32>
    %190 = vector.extract_strided_slice %177 {offsets = [0, 256], sizes = [8, 128], strides = [1, 1]} : vector<8x512xf32> to vector<8x128xf32>
    %191 = math.tanh %190 : vector<8x128xf32>
    %192 = vector.extract_strided_slice %177 {offsets = [0, 384], sizes = [8, 128], strides = [1, 1]} : vector<8x512xf32> to vector<8x128xf32>
    %193 = arith.negf %192 : vector<8x128xf32>
    %194 = math.exp %193 : vector<8x128xf32>
    %cst_51 = arith.constant 1.000000e+00 : f32
    %195 = vector.broadcast %cst_51 : f32 to vector<8x128xf32>
    %196 = arith.addf %195, %194 : vector<8x128xf32>
    %197 = arith.divf %195, %196 : vector<8x128xf32>
    %198 = arith.mulf %189, %167 : vector<8x128xf32>
    %199 = arith.mulf %183, %191 : vector<8x128xf32>
    %200 = arith.addf %198, %199 : vector<8x128xf32>
    %201 = math.tanh %200 : vector<8x128xf32>
    %202 = arith.mulf %197, %201 : vector<8x128xf32>
    %c6_i32 = arith.constant 6 : i32
    %203 = arith.index_cast %c6_i32 : i32 to index
    %c0_52 = arith.constant 0 : index
    %c0_53 = arith.constant 0 : index
    %204 = vector.load %arg2[%203, %c0_52, %c0_53] : memref<8x8x512xbf16, #tpu.memory_space<vmem>>, vector<1x8x512xbf16>
    %205 = vector.shape_cast %204 : vector<1x8x512xbf16> to vector<8x512xbf16>
    %206 = arith.extf %205 : vector<8x512xbf16> to vector<8x512xf32>
    %207 = arith.truncf %202 : vector<8x128xf32> to vector<8x128xbf16>
    %c0_54 = arith.constant 0 : index
    %c0_55 = arith.constant 0 : index
    %208 = vector.load %arg3[%c0_54, %c0_55] : memref<128x512xbf16, #tpu.memory_space<vmem>>, vector<128x512xbf16>
    %cst_56 = arith.constant dense<0.000000e+00> : vector<8x512xf32>
    %209 = tpu.matmul %207, %208, %cst_56 {dimension_numbers = #tpu.dot_dimension_numbers<[1], [0], [0], [1], [0, 0, 1, 1], [], []>} : vector<8x128xbf16>, vector<128x512xbf16>, vector<8x512xf32> -> vector<8x512xf32>
    %210 = arith.addf %206, %209 : vector<8x512xf32>
    %211 = vector.extract_strided_slice %210 {offsets = [0, 0], sizes = [8, 128], strides = [1, 1]} : vector<8x512xf32> to vector<8x128xf32>
    %212 = arith.negf %211 : vector<8x128xf32>
    %213 = math.exp %212 : vector<8x128xf32>
    %cst_57 = arith.constant 1.000000e+00 : f32
    %214 = vector.broadcast %cst_57 : f32 to vector<8x128xf32>
    %215 = arith.addf %214, %213 : vector<8x128xf32>
    %216 = arith.divf %214, %215 : vector<8x128xf32>
    %217 = vector.extract_strided_slice %210 {offsets = [0, 128], sizes = [8, 128], strides = [1, 1]} : vector<8x512xf32> to vector<8x128xf32>
    %218 = arith.negf %217 : vector<8x128xf32>
    %219 = math.exp %218 : vector<8x128xf32>
    %cst_58 = arith.constant 1.000000e+00 : f32
    %220 = vector.broadcast %cst_58 : f32 to vector<8x128xf32>
    %221 = arith.addf %220, %219 : vector<8x128xf32>
    %222 = arith.divf %220, %221 : vector<8x128xf32>
    %223 = vector.extract_strided_slice %210 {offsets = [0, 256], sizes = [8, 128], strides = [1, 1]} : vector<8x512xf32> to vector<8x128xf32>
    %224 = math.tanh %223 : vector<8x128xf32>
    %225 = vector.extract_strided_slice %210 {offsets = [0, 384], sizes = [8, 128], strides = [1, 1]} : vector<8x512xf32> to vector<8x128xf32>
    %226 = arith.negf %225 : vector<8x128xf32>
    %227 = math.exp %226 : vector<8x128xf32>
    %cst_59 = arith.constant 1.000000e+00 : f32
    %228 = vector.broadcast %cst_59 : f32 to vector<8x128xf32>
    %229 = arith.addf %228, %227 : vector<8x128xf32>
    %230 = arith.divf %228, %229 : vector<8x128xf32>
    %231 = arith.mulf %222, %200 : vector<8x128xf32>
    %232 = arith.mulf %216, %224 : vector<8x128xf32>
    %233 = arith.addf %231, %232 : vector<8x128xf32>
    %234 = math.tanh %233 : vector<8x128xf32>
    %235 = arith.mulf %230, %234 : vector<8x128xf32>
    %c7_i32 = arith.constant 7 : i32
    %236 = arith.index_cast %c7_i32 : i32 to index
    %c0_60 = arith.constant 0 : index
    %c0_61 = arith.constant 0 : index
    %237 = vector.load %arg2[%236, %c0_60, %c0_61] : memref<8x8x512xbf16, #tpu.memory_space<vmem>>, vector<1x8x512xbf16>
    %238 = vector.shape_cast %237 : vector<1x8x512xbf16> to vector<8x512xbf16>
    %239 = arith.extf %238 : vector<8x512xbf16> to vector<8x512xf32>
    %240 = arith.truncf %235 : vector<8x128xf32> to vector<8x128xbf16>
    %c0_62 = arith.constant 0 : index
    %c0_63 = arith.constant 0 : index
    %241 = vector.load %arg3[%c0_62, %c0_63] : memref<128x512xbf16, #tpu.memory_space<vmem>>, vector<128x512xbf16>
    %cst_64 = arith.constant dense<0.000000e+00> : vector<8x512xf32>
    %242 = tpu.matmul %240, %241, %cst_64 {dimension_numbers = #tpu.dot_dimension_numbers<[1], [0], [0], [1], [0, 0, 1, 1], [], []>} : vector<8x128xbf16>, vector<128x512xbf16>, vector<8x512xf32> -> vector<8x512xf32>
    %243 = arith.addf %239, %242 : vector<8x512xf32>
    %244 = vector.extract_strided_slice %243 {offsets = [0, 0], sizes = [8, 128], strides = [1, 1]} : vector<8x512xf32> to vector<8x128xf32>
    %245 = arith.negf %244 : vector<8x128xf32>
    %246 = math.exp %245 : vector<8x128xf32>
    %cst_65 = arith.constant 1.000000e+00 : f32
    %247 = vector.broadcast %cst_65 : f32 to vector<8x128xf32>
    %248 = arith.addf %247, %246 : vector<8x128xf32>
    %249 = arith.divf %247, %248 : vector<8x128xf32>
    %250 = vector.extract_strided_slice %243 {offsets = [0, 128], sizes = [8, 128], strides = [1, 1]} : vector<8x512xf32> to vector<8x128xf32>
    %251 = arith.negf %250 : vector<8x128xf32>
    %252 = math.exp %251 : vector<8x128xf32>
    %cst_66 = arith.constant 1.000000e+00 : f32
    %253 = vector.broadcast %cst_66 : f32 to vector<8x128xf32>
    %254 = arith.addf %253, %252 : vector<8x128xf32>
    %255 = arith.divf %253, %254 : vector<8x128xf32>
    %256 = vector.extract_strided_slice %243 {offsets = [0, 256], sizes = [8, 128], strides = [1, 1]} : vector<8x512xf32> to vector<8x128xf32>
    %257 = math.tanh %256 : vector<8x128xf32>
    %258 = vector.extract_strided_slice %243 {offsets = [0, 384], sizes = [8, 128], strides = [1, 1]} : vector<8x512xf32> to vector<8x128xf32>
    %259 = arith.negf %258 : vector<8x128xf32>
    %260 = math.exp %259 : vector<8x128xf32>
    %cst_67 = arith.constant 1.000000e+00 : f32
    %261 = vector.broadcast %cst_67 : f32 to vector<8x128xf32>
    %262 = arith.addf %261, %260 : vector<8x128xf32>
    %263 = arith.divf %261, %262 : vector<8x128xf32>
    %264 = arith.mulf %255, %233 : vector<8x128xf32>
    %265 = arith.mulf %249, %257 : vector<8x128xf32>
    %266 = arith.addf %264, %265 : vector<8x128xf32>
    %267 = math.tanh %266 : vector<8x128xf32>
    %268 = arith.mulf %263, %267 : vector<8x128xf32>
    %c8_i32 = arith.constant 8 : i32
    %c0_68 = arith.constant 0 : index
    %c0_69 = arith.constant 0 : index
    %269 = vector.load %arg5[%c0_68, %c0_69] : memref<8x128xf32, #tpu.memory_space<vmem>>, vector<8x128xf32>
    tpu.vector_store %arg5[%c0_68, %c0_69], %268 {strides = array<i32>} : memref<8x128xf32, #tpu.memory_space<vmem>>, vector<8x128xf32>,
    %c0_70 = arith.constant 0 : index
    %c0_71 = arith.constant 0 : index
    %270 = vector.load %arg6[%c0_70, %c0_71] : memref<8x128xf32, #tpu.memory_space<vmem>>, vector<8x128xf32>
    tpu.vector_store %arg6[%c0_70, %c0_71], %266 {strides = array<i32>} : memref<8x128xf32, #tpu.memory_space<vmem>>, vector<8x128xf32>,
    %c0_i32_72 = arith.constant 0 : i32
    %271 = arith.cmpi eq, %arg1, %c0_i32_72 : i32
    %272 = arith.extui %271 : i1 to i32
    %c0_i32_73 = arith.constant 0 : i32
    %273 = arith.cmpi ne, %272, %c0_i32_73 : i32
    scf.if %273 {
      %c0_74 = arith.constant 0 : index
      %c0_75 = arith.constant 0 : index
      %274 = vector.load %arg4[%c0_74, %c0_75] : memref<8x128xf32, #tpu.memory_space<vmem>>, vector<8x128xf32>
      tpu.vector_store %arg4[%c0_74, %c0_75], %268 {strides = array<i32>} : memref<8x128xf32, #tpu.memory_space<vmem>>, vector<8x128xf32>,
    } else {
    }
    return
  }
  func.func @transform_0(%arg0: i32, %arg1: i32) -> (i32, i32, i32) {
    %c0_i32 = arith.constant 0 : i32
    %c0_i32_0 = arith.constant 0 : i32
    return %arg1, %arg0, %c0_i32 : i32, i32, i32
  }
  func.func @transform_1(%arg0: i32, %arg1: i32) -> (i32, i32) {
    %c0_i32 = arith.constant 0 : i32
    %c0_i32_0 = arith.constant 0 : i32
    %c0_i32_1 = arith.constant 0 : i32
    return %c0_i32, %c0_i32_0 : i32, i32
  }
  func.func @transform_2(%arg0: i32, %arg1: i32) -> (i32, i32) {
    %c0_i32 = arith.constant 0 : i32
    %c0_i32_0 = arith.constant 0 : i32
    return %arg0, %c0_i32 : i32, i32
  }
}

</mosaic_0001>

<bundles_post_ra>
// kernel: comments_classifier_forward.1
= control target key start
LH: loop header
LB: loop body
LE: loop exit
PB: predicated region body
PF: predicated region fallthrough
CT: control target
= control target key end

     0   :  { %s2170_s1 = inlined_call_operand.vmem [shape: bf16[128,512], index: 1, kind: input, shape index: {}]   ;;  %s2171_s0 = inlined_call_operand.vmem [shape: bf16[8,8,512], index: 0, kind: input, shape index: {}]   ;;  %s2172_s2 = inlined_call_operand.vmem [shape: f32[8,128], index: 2, kind: output, shape index: {}]  }
   0x1   :  { %v1350_v0 = vld [vmem:[%s2170_s1 + $0xe0] sm:$0xf]  ;;  %v1432_v1 = vld [vmem:[%s2170_s1 + $0xec] sm:$0xf0]  ;;  %v1430_v2 = vld [vmem:[%s2170_s1 + $0xe4] sm:$0xf] }
   0x2   :  { %v1588_v3 = vor.u32 %v1432_v1, %v1350_v0  ;;  %v1352_v4 = vld [vmem:[%s2170_s1 + $0xf0] sm:$0xf0]  ;;  %v1431_v5 = vld [vmem:[%s2170_s1 + $0xec] sm:$0xf]  ;;  %v1360_v6 = vld [vmem:[%s2170_s1 + $0xf8] sm:$0xf0] }
   0x3   :  { %v1599_v7 = vor.u32 %v1430_v2, %v1352_v4  ;;  %v1601_v8 = vor.u32 %v1431_v5, %v1360_v6  ;;  %v1334_v9 = vld [vmem:[%s2170_s1 + $0xc0] sm:$0xf]  ;;  %v1428_v10 = vld [vmem:[%s2170_s1 + $0xcc] sm:$0xf0]  ;;  %v1426_v11 = vld [vmem:[%s2170_s1 + $0xc4] sm:$0xf] }
   0x4   :  { %218 = vmatpush.bf16.msra.mxu0 %v1588_v3  ;;  %v1613_v12 = vor.u32 %v1428_v10, %v1334_v9  ;;  %v1336_v13 = vld [vmem:[%s2170_s1 + $0xd0] sm:$0xf0]  ;;  %v1427_v14 = vld [vmem:[%s2170_s1 + $0xcc] sm:$0xf]  ;;  %v1344_v15 = vld [vmem:[%s2170_s1 + $0xd8] sm:$0xf0] }
   0x5   :  { %231 = vmatpush.bf16.msra.mxu1 %v1599_v7  ;;  %257 = vmatpush.bf16.msra.mxu3 %v1601_v8  ;;  %v1626_v16 = vor.u32 %v1426_v11, %v1336_v13  ;;  %v1628_v17 = vor.u32 %v1427_v14, %v1344_v15  ;;  %v1358_v18 = vld [vmem:[%s2170_s1 + $0xe8] sm:$0xf]  ;;  %v1433_v19 = vld [vmem:[%s2170_s1 + $0xf4] sm:$0xf0]  ;;  %v1318_v20 = vld [vmem:[%s2170_s1 + $0xa0] sm:$0xf] }
   0x6   :  { %v1639_v21 = vor.u32 %v1433_v19, %v1358_v18  ;;  %v1424_v22 = vld [vmem:[%s2170_s1 + $0xac] sm:$0xf0]  ;;  %v1422_v23 = vld [vmem:[%s2170_s1 + $0xa4] sm:$0xf]  ;;  %v1320_v24 = vld [vmem:[%s2170_s1 + $0xb0] sm:$0xf0] }
   0x7   :  { %v1423_v25 = vld [vmem:[%s2170_s1 + $0xac] sm:$0xf]  ;;  %v1328_v26 = vld [vmem:[%s2170_s1 + $0xb8] sm:$0xf0]  ;;  %v1342_v27 = vld [vmem:[%s2170_s1 + $0xc8] sm:$0xf]  ;;  %v1661_v28 = vor.u32 %v1424_v22, %v1318_v20  ;;  %v1674_v32 = vor.u32 %v1422_v23, %v1320_v24 }
   0x8   :  { %219 = vmatpush.bf16.msra.mxu0 %v1613_v12  ;;  %244 = vmatpush.bf16.msra.mxu2 %v1639_v21  ;;  %v1429_v29 = vld [vmem:[%s2170_s1 + $0xd4] sm:$0xf0]  ;;  %v1302_v30 = vld [vmem:[%s2170_s1 + $0x80] sm:$0xf]  ;;  %v1420_v31 = vld [vmem:[%s2170_s1 + $0x8c] sm:$0xf0]  ;;  %v1676_v33 = vor.u32 %v1423_v25, %v1328_v26 }
   0x9   :  { %232 = vmatpush.bf16.msra.mxu1 %v1626_v16  ;;  %258 = vmatpush.bf16.msra.mxu3 %v1628_v17  ;;  %v1678_v34 = vor.u32 %v1429_v29, %v1342_v27  ;;  %v1418_v35 = vld [vmem:[%s2170_s1 + $0x84] sm:$0xf]  ;;  %v1304_v36 = vld [vmem:[%s2170_s1 + $0x90] sm:$0xf0]  ;;  %v1419_v37 = vld [vmem:[%s2170_s1 + $0x8c] sm:$0xf]  ;;  %v1700_v41 = vor.u32 %v1420_v31, %v1302_v30 }
   0xa   :  { %v1312_v38 = vld [vmem:[%s2170_s1 + $0x98] sm:$0xf0]  ;;  %v1326_v39 = vld [vmem:[%s2170_s1 + $0xa8] sm:$0xf]  ;;  %v1425_v40 = vld [vmem:[%s2170_s1 + $0xb4] sm:$0xf0]  ;;  %v1712_v45 = vor.u32 %v1418_v35, %v1304_v36 }
   0xb   :  { %v1702_v42 = vor.u32 %v1425_v40, %v1326_v39  ;;  %v1286_v43 = vld [vmem:[%s2170_s1 + $0x60] sm:$0xf]  ;;  %v1416_v44 = vld [vmem:[%s2170_s1 + $0x6c] sm:$0xf0]  ;;  %v1714_v46 = vor.u32 %v1419_v37, %v1312_v38  ;;  %v1414_v47 = vld [vmem:[%s2170_s1 + $0x64] sm:$0xf] }
   0xc   :  { %220 = vmatpush.bf16.msra.mxu0 %v1661_v28  ;;  %245 = vmatpush.bf16.msra.mxu2 %v1678_v34  ;;  %v1310_v48 = vld [vmem:[%s2170_s1 + $0x88] sm:$0xf]  ;;  %v1421_v49 = vld [vmem:[%s2170_s1 + $0x94] sm:$0xf0]  ;;  %v1288_v50 = vld [vmem:[%s2170_s1 + $0x70] sm:$0xf0]  ;;  %v1736_v53 = vor.u32 %v1416_v44, %v1286_v43 }
   0xd   :  { %233 = vmatpush.bf16.msra.mxu1 %v1674_v32  ;;  %259 = vmatpush.bf16.msra.mxu3 %v1676_v33  ;;  %v1415_v51 = vld [vmem:[%s2170_s1 + $0x6c] sm:$0xf]  ;;  %v1296_v52 = vld [vmem:[%s2170_s1 + $0x78] sm:$0xf0]  ;;  %v1738_v54 = vor.u32 %v1421_v49, %v1310_v48  ;;  %v1270_v55 = vld [vmem:[%s2170_s1 + $0x40] sm:$0xf]  ;;  %v1748_v57 = vor.u32 %v1414_v47, %v1288_v50 }
   0xe   :  { %v1412_v56 = vld [vmem:[%s2170_s1 + $0x4c] sm:$0xf0]  ;;  %v1750_v58 = vor.u32 %v1415_v51, %v1296_v52  ;;  %v1410_v59 = vld [vmem:[%s2170_s1 + $0x44] sm:$0xf]  ;;  %v1294_v60 = vld [vmem:[%s2170_s1 + $0x68] sm:$0xf] }
   0xf   :  { %v1417_v61 = vld [vmem:[%s2170_s1 + $0x74] sm:$0xf0]  ;;  %v1272_v62 = vld [vmem:[%s2170_s1 + $0x50] sm:$0xf0]  ;;  %v1411_v63 = vld [vmem:[%s2170_s1 + $0x4c] sm:$0xf]  ;;  %v1772_v1 = vor.u32 %v1412_v56, %v1270_v55 }
  0x10   :  { %221 = vmatpush.bf16.msra.mxu0 %v1700_v41  ;;  %246 = vmatpush.bf16.msra.mxu2 %v1702_v42  ;;  %v1280_v0 = vld [vmem:[%s2170_s1 + $0x58] sm:$0xf0]  ;;  %v1774_v2 = vor.u32 %v1417_v61, %v1294_v60  ;;  %v1254_v4 = vld [vmem:[%s2170_s1 + $0x20] sm:$0xf]  ;;  %v1408_v5 = vld [vmem:[%s2170_s1 + $0x2c] sm:$0xf0]  ;;  %v1784_v6 = vor.u32 %v1410_v59, %v1272_v62 }
  0x11   :  { %234 = vmatpush.bf16.msra.mxu1 %v1712_v45  ;;  %260 = vmatpush.bf16.msra.mxu3 %v1714_v46  ;;  %v1786_v9 = vor.u32 %v1411_v63, %v1280_v0  ;;  %v1406_v10 = vld [vmem:[%s2170_s1 + $0x24] sm:$0xf]  ;;  %v1278_v11 = vld [vmem:[%s2170_s1 + $0x48] sm:$0xf]  ;;  %v1413_v13 = vld [vmem:[%s2170_s1 + $0x54] sm:$0xf0]  ;;  %v1808_v19 = vor.u32 %v1408_v5, %v1254_v4 }
  0x12   :  { %v1256_v14 = vld [vmem:[%s2170_s1 + $0x30] sm:$0xf0]  ;;  %v1407_v15 = vld [vmem:[%s2170_s1 + $0x2c] sm:$0xf]  ;;  %v1264_v18 = vld [vmem:[%s2170_s1 + $0x38] sm:$0xf0]  ;;  %v1810_v20 = vor.u32 %v1413_v13, %v1278_v11 }
  0x13   :  { %v1238_v22 = vld [vmem:[%s2170_s1] sm:$0xf]  ;;  %v1404_v23 = vld [vmem:[%s2170_s1 + $0xc] sm:$0xf0]  ;;  %v1820_v24 = vor.u32 %v1406_v10, %v1256_v14  ;;  %v1822_v25 = vor.u32 %v1407_v15, %v1264_v18  ;;  %v1402_v26 = vld [vmem:[%s2170_s1 + $0x4] sm:$0xf] }
  0x14   :  { %222 = vmatpush.bf16.msra.mxu0 %v1736_v53  ;;  %247 = vmatpush.bf16.msra.mxu2 %v1738_v54  ;;  %v1262_v27 = vld [vmem:[%s2170_s1 + $0x28] sm:$0xf]  ;;  %v1409_v29 = vld [vmem:[%s2170_s1 + $0x34] sm:$0xf0]  ;;  %v1240_v30 = vld [vmem:[%s2170_s1 + $0x10] sm:$0xf0]  ;;  %v1844_v36 = vor.u32 %v1404_v23, %v1238_v22 }
  0x15   :  { %235 = vmatpush.bf16.msra.mxu1 %v1748_v57  ;;  %261 = vmatpush.bf16.msra.mxu3 %v1750_v58  ;;  %v1403_v31 = vld [vmem:[%s2170_s1 + $0xc] sm:$0xf]  ;;  %v1248_v35 = vld [vmem:[%s2170_s1 + $0x18] sm:$0xf0]  ;;  %v1846_v37 = vor.u32 %v1409_v29, %v1262_v27  ;;  %v1850_v38 = vor.u32 %v1402_v26, %v1240_v30  ;;  %v1246_v40 = vld [vmem:[%s2170_s1 + $0x8] sm:$0xf] }
  0x16   :  { %v1852_v39 = vor.u32 %v1403_v31, %v1248_v35  ;;  %v1405_v43 = vld [vmem:[%s2170_s1 + $0x14] sm:$0xf0]  ;;  %v1563_v47 = vmov 0.0|0.0   ;;  %v19_v48 = vld [vmem:[%s2171_s0] sm:$0xff]  ;;  %v20_v56 = vld [vmem:[%s2171_s0 + $0x8] sm:$0xff] }
  0x17   :  { %v1864_v44 = vor.u32 %v1405_v43, %v1246_v40  ;;  %v21_v49 = vunpack.c.l.bf16 %v19_v48  ;;  %v22_v50 = vunpack.c.h.bf16 %v19_v48  ;;  %v24_v62 = vunpack.c.h.bf16 %v20_v56 }
  0x18   :  { %223 = vmatpush.bf16.msra.mxu0 %v1772_v1  ;;  %248 = vmatpush.bf16.msra.mxu2 %v1774_v2  ;;  %v23_v22 = vunpack.c.l.bf16 %v20_v56 }
  0x19   :  { %236 = vmatpush.bf16.msra.mxu1 %v1784_v6  ;;  %262 = vmatpush.bf16.msra.mxu3 %v1786_v9 }
  0x1c   :  { %224 = vmatpush.bf16.msra.mxu0 %v1808_v19  ;;  %249 = vmatpush.bf16.msra.mxu2 %v1810_v20 }
  0x1d   :  { %237 = vmatpush.bf16.msra.mxu1 %v1820_v24  ;;  %263 = vmatpush.bf16.msra.mxu3 %v1822_v25 }
  0x20   :  { %225 = vmatpush.bf16.msra.mxu0 %v1844_v36  ;;  %250 = vmatpush.bf16.msra.mxu2 %v1846_v37 }
  0x21   :  { %238 = vmatpush.bf16.msra.mxu1 %v1850_v38  ;;  %264 = vmatpush.bf16.msra.mxu3 %v1852_v39 }
  0x23   :  { %226 = vmatmul.bf16.vlgmr.msra.gmra.mxu0 %v1563_v47 }
  0x24   :  { %345 = vmatpush.bf16.msrb.mxu0 %v1588_v3  ;;  %239 = vmatmul.bf16.vlgmr.msra.gmra.mxu1 %v1563_v47 }
  0x25   :  { %358 = vmatpush.bf16.msrb.mxu1 %v1599_v7  ;;  %384 = vmatpush.bf16.msrb.mxu3 %v1601_v8 }
  0x26   :  { %265 = vmatmul.bf16.vlgmr.msra.gmra.mxu3 %v1563_v47  ;;  %251 = vmatpush.bf16.msra.mxu2 %v1864_v44 }
  0x28   :  { %346 = vmatpush.bf16.msrb.mxu0 %v1613_v12 }
  0x29   :  { %359 = vmatpush.bf16.msrb.mxu1 %v1626_v16  ;;  %385 = vmatpush.bf16.msrb.mxu3 %v1628_v17 }
  0x2a   :  { %371 = vmatpush.bf16.msrb.mxu2 %v1639_v21 }
  0x2b   :  { %252 = vmatmul.bf16.vlgmr.msra.gmra.mxu2 %v1563_v47 }
  0x2c   :  { %347 = vmatpush.bf16.msrb.mxu0 %v1661_v28 }
  0x2d   :  { %360 = vmatpush.bf16.msrb.mxu1 %v1674_v32  ;;  %386 = vmatpush.bf16.msrb.mxu3 %v1676_v33 }
  0x2e   :  { %372 = vmatpush.bf16.msrb.mxu2 %v1678_v34 }
  0x30   :  { %348 = vmatpush.bf16.msrb.mxu0 %v1700_v41 }
  0x31   :  { %361 = vmatpush.bf16.msrb.mxu1 %v1712_v45  ;;  %387 = vmatpush.bf16.msrb.mxu3 %v1714_v46 }
  0x32   :  { %373 = vmatpush.bf16.msrb.mxu2 %v1702_v42 }
  0x34   :  { %349 = vmatpush.bf16.msrb.mxu0 %v1736_v53 }
  0x35   :  { %362 = vmatpush.bf16.msrb.mxu1 %v1748_v57  ;;  %388 = vmatpush.bf16.msrb.mxu3 %v1750_v58 }
  0x36   :  { %374 = vmatpush.bf16.msrb.mxu2 %v1738_v54 }
  0x38   :  { %350 = vmatpush.bf16.msrb.mxu0 %v1772_v1 }
  0x39   :  { %363 = vmatpush.bf16.msrb.mxu1 %v1784_v6  ;;  %389 = vmatpush.bf16.msrb.mxu3 %v1786_v9 }
  0x3a   :  { %375 = vmatpush.bf16.msrb.mxu2 %v1774_v2 }
  0x3c   :  { %351 = vmatpush.bf16.msrb.mxu0 %v1808_v19 }
  0x3d   :  { %364 = vmatpush.bf16.msrb.mxu1 %v1820_v24  ;;  %390 = vmatpush.bf16.msrb.mxu3 %v1822_v25 }
  0x3e   :  { %376 = vmatpush.bf16.msrb.mxu2 %v1810_v20 }
  0x40   :  { %352 = vmatpush.bf16.msrb.mxu0 %v1844_v36 }
  0x41   :  { %365 = vmatpush.bf16.msrb.mxu1 %v1850_v38  ;;  %391 = vmatpush.bf16.msrb.mxu3 %v1852_v39 }
  0x42   :  { %377 = vmatpush.bf16.msrb.mxu2 %v1846_v37 }
  0x44   :  { %472 = vmatpush.bf16.msra.mxu0 %v1588_v3 }
  0x45   :  { %485 = vmatpush.bf16.msra.mxu1 %v1599_v7  ;;  %511 = vmatpush.bf16.msra.mxu3 %v1601_v8 }
  0x46   :  { %378 = vmatpush.bf16.msrb.mxu2 %v1864_v44 }
  0x48   :  { %473 = vmatpush.bf16.msra.mxu0 %v1613_v12 }
  0x49   :  { %486 = vmatpush.bf16.msra.mxu1 %v1626_v16  ;;  %512 = vmatpush.bf16.msra.mxu3 %v1628_v17 }
  0x4a   :  { %498 = vmatpush.bf16.msra.mxu2 %v1639_v21 }
  0x4c   :  { %474 = vmatpush.bf16.msra.mxu0 %v1661_v28 }
  0x4d   :  { %487 = vmatpush.bf16.msra.mxu1 %v1674_v32  ;;  %513 = vmatpush.bf16.msra.mxu3 %v1676_v33 }
  0x4e   :  { %499 = vmatpush.bf16.msra.mxu2 %v1678_v34 }
  0x50   :  { %475 = vmatpush.bf16.msra.mxu0 %v1700_v41 }
  0x51   :  { %488 = vmatpush.bf16.msra.mxu1 %v1712_v45  ;;  %514 = vmatpush.bf16.msra.mxu3 %v1714_v46 }
  0x52   :  { %500 = vmatpush.bf16.msra.mxu2 %v1702_v42 }
  0x54   :  { %476 = vmatpush.bf16.msra.mxu0 %v1736_v53 }
  0x55   :  { %489 = vmatpush.bf16.msra.mxu1 %v1748_v57  ;;  %515 = vmatpush.bf16.msra.mxu3 %v1750_v58 }
  0x56   :  { %501 = vmatpush.bf16.msra.mxu2 %v1738_v54 }
  0x58   :  { %477 = vmatpush.bf16.msra.mxu0 %v1772_v1 }
  0x59   :  { %490 = vmatpush.bf16.msra.mxu1 %v1784_v6  ;;  %516 = vmatpush.bf16.msra.mxu3 %v1786_v9 }
  0x5a   :  { %502 = vmatpush.bf16.msra.mxu2 %v1774_v2 }
  0x5c   :  { %478 = vmatpush.bf16.msra.mxu0 %v1808_v19 }
  0x5d   :  { %491 = vmatpush.bf16.msra.mxu1 %v1820_v24  ;;  %517 = vmatpush.bf16.msra.mxu3 %v1822_v25 }
  0x5e   :  { %503 = vmatpush.bf16.msra.mxu2 %v1810_v20 }
  0x60   :  { %479 = vmatpush.bf16.msra.mxu0 %v1844_v36 }
  0x61   :  { %492 = vmatpush.bf16.msra.mxu1 %v1850_v38  ;;  %518 = vmatpush.bf16.msra.mxu3 %v1852_v39 }
  0x62   :  { %504 = vmatpush.bf16.msra.mxu2 %v1846_v37 }
  0x66   :  { %505 = vmatpush.bf16.msra.mxu2 %v1864_v44 }
  0xa0   :  { %v227_v51 = vpop.f32.mrf.mxu0 }
  0xa1   :  { %v270_v52 = vadd.f32 %v227_v51, %v21_v49  ;;  %v240_v55 = vpop.f32.mrf.mxu1 }
  0xa2   :  { %v271_v59 = vadd.f32 %v240_v55, %v22_v50 }
  0xa3   :  { %v1364_v60 = vmul.f32 -1.442695, %v270_v52 }
  0xa4   :  { %v1365_v61 = vmul.f32 -1.442695, %v271_v59 }
  0xa5   :  { %1435 = vpow2.f32 %v1364_v60 }
  0xa6   :  { %1437 = vpow2.f32 %v1365_v61 }
  0xa8   :  { %v229_v4 = vpop.f32.mrf.mxu0 }
  0xa9   :  { %v266_v63 = vpop.f32.mrf.mxu3  ;;  %v242_v5 = vpop.f32.mrf.mxu1 }
  0xaa   :  { %v273_v0 = vadd.f32 %v266_v63, %v24_v62 }
  0xab   :  { %v1436_v11 = vpop.eup %1435 }
  0xac   :  { %v1366_v10 = vmul.f32 -1.442695, %v273_v0  ;;  %v1438_v14 = vpop.eup %1437  ;;  %v277_v15 = vadd.f32 1.0, %v1436_v11 }
  0xad   :  { %v296_v18 = vadd.f32 1.0, %v1438_v14 }
  0xae   :  { %v253_v13 = vpop.f32.mrf.mxu2  ;;  %1439 = vpow2.f32 %v1366_v10  ;;  %v289_v49 = vand.u32 2147483648, %v277_v15  ;;  %v287_v52 = vand.u32 2147483647, %v277_v15  ;;  %vm283_vm2 = vweird.f32 %v277_v15 }
  0xaf   :  { %1441 = vrcp.f32 %v277_v15  ;;  %v272_v27 = vadd.f32 %v253_v13, %v23_v22  ;;  %v308_v50 = vand.u32 2147483648, %v296_v18  ;;  %v306_v56 = vand.u32 2147483647, %v296_v18 }
  0xb0   :  { %1443 = vrcp.f32 %v296_v18  ;;  %vm302_vm3 = vweird.f32 %v296_v18  ;;  %v290_v63 = vor.u32 1.1754944e-38, %v289_v49  ;;  %vm288_vm5 = vcmp.eq.f32.partialorder %v287_v52, 8.507059e+37 }
  0xb1   :  { %v268_v23 = vpop.f32.mrf.mxu3  ;;  %v309_v4 = vor.u32 1.1754944e-38, %v308_v50  ;;  %vm307_vm7 = vcmp.eq.f32.partialorder %v306_v56, 8.507059e+37 }
  0xb4   :  { %v1440_v26 = vpop.eup %1439 }
  0xb5   :  { %v316_v29 = vadd.f32 1.0, %v1440_v26  ;;  %v1442_v31 = vpop.eup %1441 }
  0xb6   :  { %v255_v30 = vpop.f32.mrf.mxu2  ;;  %v1444_v35 = vpop.eup %1443  ;;  %v279_v40 = vmul.f32 %v1442_v31, %v277_v15  ;;  %vm284_vm0 = vweird.f32 %v1442_v31 }
  0xb7   :  { %1445 = vrcp.f32 %v316_v29  ;;  %v298_v43 = vmul.f32 %v1444_v35, %v296_v18  ;;  %vm303_vm1 = vweird.f32 %v1444_v35  ;;  %vm285_vm4 = vmor %vm283_vm2, %vm284_vm0  ;;  %v328_v18 = vand.u32 2147483648, %v316_v29 }
  0xb8   :  { %1447 = vtanh.f32 %v272_v27  ;;  %v280_v47 = vsub.f32 1.0, %v279_v40  ;;  %vm304_vm6 = vmor %vm302_vm3, %vm303_vm1  ;;  %vm322_vm9 = vweird.f32 %v316_v29  ;;  %v326_v30 = vand.u32 2147483647, %v316_v29 }
  0xb9   :  { %v299_v48 = vsub.f32 1.0, %v298_v43  ;;  %v329_v40 = vor.u32 1.1754944e-38, %v328_v18 }
  0xba   :  { %v281_v51 = vmul.f32 %v1442_v31, %v280_v47  ;;  %vm327_vm11 = vcmp.eq.f32.partialorder %v326_v30, 8.507059e+37 }
  0xbb   :  { %v300_v55 = vmul.f32 %v1444_v35, %v299_v48 }
  0xbc   :  { %v282_v60 = vadd.f32 %v1442_v31, %v281_v51 }
  0xbd   :  { %v1446_v59 = vpop.eup %1445  ;;  %v301_v0 = vadd.f32 %v1444_v35, %v300_v55 }
  0xbe   :  { %v1448_v61 = vpop.eup %1447  ;;  %v318_v62 = vmul.f32 %v1446_v59, %v316_v29  ;;  %v286_v5 = vsel %vm285_vm4, %v1442_v31, %v282_v60  ;;  %vm323_vm8 = vweird.f32 %v1446_v59  ;;  %v1367_v29 = vld [vmem:[%s2171_s0 + $0x10] sm:$0xff] }
  0xbf   :  { %v291_v11 = vsel %vm288_vm5, %v290_v63, %v286_v5  ;;  %v305_v13 = vsel %vm304_vm6, %v1444_v35, %v301_v0  ;;  %vm324_vm10 = vmor %vm322_vm9, %vm323_vm8  ;;  %v340_v49 = vunpack.c.l.bf16 %v1367_v29  ;;  %v341_v50 = vunpack.c.h.bf16 %v1367_v29 }
  0xc0   :  { %v319_v10 = vsub.f32 1.0, %v318_v62  ;;  %v310_v14 = vsel %vm307_vm7, %v309_v4, %v305_v13  ;;  %v333_v22 = vmul.f32 %v1448_v61, %v291_v11 }
  0xc1   :  { %v332_v23 = vmul.f32 0.0, %v310_v14 }
  0xc2   :  { %v320_v26 = vmul.f32 %v1446_v59, %v319_v10 }
  0xc3   :  { %v1937_v27 = vadd.f32 %v333_v22, %v332_v23 }
  0xc4   :  { %v321_v15 = vadd.f32 %v1446_v59, %v320_v26 }
  0xc5   :  { %1449 = vtanh.f32 %v1937_v27 }
  0xc6   :  { %v325_v31 = vsel %vm324_vm10, %v1446_v59, %v321_v15  ;;  %v1368_v59 = vld [vmem:[%s2171_s0 + $0x18] sm:$0xff] }
  0xc7   :  { %v330_v35 = vsel %vm327_vm11, %v329_v40, %v325_v31  ;;  %v343_v62 = vunpack.c.h.bf16 %v1368_v59  ;;  %v342_v18 = vunpack.c.l.bf16 %v1368_v59 }
  0xcb   :  { %v1450_v43 = vpop.eup %1449 }
  0xcc   :  { %v336_v47 = vmul.f32 %v1450_v43, %v330_v35 }
  0xce   :  { %v344_v48 = vpack.c.bf16 %v336_v47, %v336_v47 }
  0xd0   :  { %353 = vmatmul.bf16.vlgmr.msrb.gmra.mxu0 %v344_v48  ;;  %366 = vmatmul.bf16.vlgmr.msrb.gmra.mxu1 %v344_v48 }
  0xd1   :  { %379 = vmatmul.bf16.vlgmr.msrb.gmra.mxu2 %v344_v48  ;;  %392 = vmatmul.bf16.vlgmr.msrb.gmra.mxu3 %v344_v48 }
  0xd2   :  { %599 = vmatpush.bf16.msrb.mxu0 %v1588_v3  ;;  %612 = vmatpush.bf16.msrb.mxu1 %v1599_v7 }
  0xd3   :  { %625 = vmatpush.bf16.msrb.mxu2 %v1639_v21  ;;  %638 = vmatpush.bf16.msrb.mxu3 %v1601_v8 }
  0xd6   :  { %600 = vmatpush.bf16.msrb.mxu0 %v1613_v12  ;;  %613 = vmatpush.bf16.msrb.mxu1 %v1626_v16 }
  0xd7   :  { %626 = vmatpush.bf16.msrb.mxu2 %v1678_v34  ;;  %639 = vmatpush.bf16.msrb.mxu3 %v1628_v17 }
  0xda   :  { %601 = vmatpush.bf16.msrb.mxu0 %v1661_v28  ;;  %614 = vmatpush.bf16.msrb.mxu1 %v1674_v32 }
  0xdb   :  { %627 = vmatpush.bf16.msrb.mxu2 %v1702_v42  ;;  %640 = vmatpush.bf16.msrb.mxu3 %v1676_v33 }
  0xde   :  { %602 = vmatpush.bf16.msrb.mxu0 %v1700_v41  ;;  %615 = vmatpush.bf16.msrb.mxu1 %v1712_v45 }
  0xdf   :  { %628 = vmatpush.bf16.msrb.mxu2 %v1738_v54  ;;  %641 = vmatpush.bf16.msrb.mxu3 %v1714_v46 }
  0xe2   :  { %603 = vmatpush.bf16.msrb.mxu0 %v1736_v53  ;;  %616 = vmatpush.bf16.msrb.mxu1 %v1748_v57 }
  0xe3   :  { %629 = vmatpush.bf16.msrb.mxu2 %v1774_v2  ;;  %642 = vmatpush.bf16.msrb.mxu3 %v1750_v58 }
  0xe6   :  { %604 = vmatpush.bf16.msrb.mxu0 %v1772_v1  ;;  %617 = vmatpush.bf16.msrb.mxu1 %v1784_v6 }
  0xe7   :  { %630 = vmatpush.bf16.msrb.mxu2 %v1810_v20  ;;  %643 = vmatpush.bf16.msrb.mxu3 %v1786_v9 }
  0xea   :  { %605 = vmatpush.bf16.msrb.mxu0 %v1808_v19  ;;  %618 = vmatpush.bf16.msrb.mxu1 %v1820_v24 }
  0xeb   :  { %631 = vmatpush.bf16.msrb.mxu2 %v1846_v37  ;;  %644 = vmatpush.bf16.msrb.mxu3 %v1822_v25 }
  0xee   :  { %606 = vmatpush.bf16.msrb.mxu0 %v1844_v36  ;;  %619 = vmatpush.bf16.msrb.mxu1 %v1850_v38 }
  0xef   :  { %632 = vmatpush.bf16.msrb.mxu2 %v1864_v44  ;;  %645 = vmatpush.bf16.msrb.mxu3 %v1852_v39 }
 0x14d   :  { %v354_v51 = vpop.f32.mrf.mxu0  ;;  %v367_v52 = vpop.f32.mrf.mxu1 }
 0x14e   :  { %v397_v55 = vadd.f32 %v354_v51, %v340_v49  ;;  %v398_v56 = vadd.f32 %v367_v52, %v341_v50 }
 0x150   :  { %v1369_v60 = vmul.f32 -1.442695, %v397_v55  ;;  %v1370_v61 = vmul.f32 -1.442695, %v398_v56 }
 0x152   :  { %1451 = vpow2.f32 %v1369_v60 }
 0x153   :  { %1453 = vpow2.f32 %v1370_v61 }
 0x154   :  { %v380_v63 = vpop.f32.mrf.mxu2  ;;  %v393_v0 = vpop.f32.mrf.mxu3 }
 0x155   :  { %v400_v4 = vadd.f32 %v393_v0, %v343_v62  ;;  %v356_v5 = vpop.f32.mrf.mxu0  ;;  %v369_v10 = vpop.f32.mrf.mxu1  ;;  %v399_v43 = vadd.f32 %v380_v63, %v342_v18 }
 0x157   :  { %v1371_v11 = vmul.f32 -1.442695, %v400_v4 }
 0x158   :  { %v1452_v13 = vpop.eup %1451 }
 0x159   :  { %v1454_v14 = vpop.eup %1453  ;;  %v404_v22 = vadd.f32 1.0, %v1452_v13  ;;  %1455 = vpow2.f32 %v1371_v11 }
 0x15a   :  { %v423_v23 = vadd.f32 1.0, %v1454_v14 }
 0x15b   :  { %1457 = vrcp.f32 %v404_v22  ;;  %v416_v50 = vand.u32 2147483648, %v404_v22  ;;  %v414_v55 = vand.u32 2147483647, %v404_v22  ;;  %vm410_vm14 = vweird.f32 %v404_v22 }
 0x15c   :  { %1459 = vrcp.f32 %v423_v23  ;;  %v382_v26 = vpop.f32.mrf.mxu2  ;;  %v395_v15 = vpop.f32.mrf.mxu3  ;;  %v435_v51 = vand.u32 2147483648, %v423_v23  ;;  %v433_v60 = vand.u32 2147483647, %v423_v23  ;;  %vm429_vm15 = vweird.f32 %v423_v23 }
 0x15d   :  { %v417_v62 = vor.u32 1.1754944e-38, %v416_v50  ;;  %vm415_vm2 = vcmp.eq.f32.partialorder %v414_v55, 8.507059e+37 }
 0x15e   :  { %v436_v4 = vor.u32 1.1754944e-38, %v435_v51  ;;  %vm434_vm3 = vcmp.eq.f32.partialorder %v433_v60, 8.507059e+37 }
 0x15f   :  { %v1456_v30 = vpop.eup %1455 }
 0x160   :  { %v443_v31 = vadd.f32 1.0, %v1456_v30 }
 0x161   :  { %v1458_v40 = vpop.eup %1457 }
 0x162   :  { %v1460_v35 = vpop.eup %1459  ;;  %v406_v47 = vmul.f32 %v1458_v40, %v404_v22  ;;  %1461 = vrcp.f32 %v443_v31  ;;  %vm411_vm12 = vweird.f32 %v1458_v40  ;;  %vm449_vm5 = vweird.f32 %v443_v31 }
 0x163   :  { %v425_v48 = vmul.f32 %v1460_v35, %v423_v23  ;;  %1463 = vtanh.f32 %v399_v43  ;;  %vm430_vm13 = vweird.f32 %v1460_v35  ;;  %vm412_vm0 = vmor %vm410_vm14, %vm411_vm12  ;;  %v455_v43 = vand.u32 2147483648, %v443_v31 }
 0x164   :  { %v407_v29 = vsub.f32 1.0, %v406_v47  ;;  %vm431_vm1 = vmor %vm429_vm15, %vm430_vm13 }
 0x165   :  { %v426_v49 = vsub.f32 1.0, %v425_v48  ;;  %v456_v48 = vor.u32 1.1754944e-38, %v455_v43 }
 0x166   :  { %v408_v52 = vmul.f32 %v1458_v40, %v407_v29 }
 0x167   :  { %v427_v56 = vmul.f32 %v1460_v35, %v426_v49 }
 0x168   :  { %v1462_v59 = vpop.eup %1461  ;;  %v409_v61 = vadd.f32 %v1458_v40, %v408_v52 }
 0x169   :  { %v428_v63 = vadd.f32 %v1460_v35, %v427_v56  ;;  %v445_v0 = vmul.f32 %v1462_v59, %v443_v31  ;;  %v1464_v10 = vpop.eup %1463  ;;  %vm450_vm4 = vweird.f32 %v1462_v59 }
 0x16a   :  { %v413_v5 = vsel %vm412_vm0, %v1458_v40, %v409_v61  ;;  %v453_v40 = vand.u32 2147483647, %v443_v31  ;;  %vm451_vm6 = vmor %vm449_vm5, %vm450_vm4 }
 0x16b   :  { %v418_v11 = vsel %vm415_vm2, %v417_v62, %v413_v5  ;;  %v432_v13 = vsel %vm431_vm1, %v1460_v35, %v428_v63  ;;  %v446_v14 = vsub.f32 1.0, %v445_v0 }
 0x16c   :  { %v437_v26 = vsel %vm434_vm3, %v436_v4, %v432_v13  ;;  %v460_v15 = vmul.f32 %v1464_v10, %v418_v11  ;;  %vm454_vm7 = vcmp.eq.f32.partialorder %v453_v40, 8.507059e+37 }
 0x16d   :  { %v459_v18 = vmul.f32 %v437_v26, %v1937_v27  ;;  %v447_v30 = vmul.f32 %v1462_v59, %v446_v14  ;;  %v1372_v27 = vld [vmem:[%s2171_s0 + $0x20] sm:$0xff] }
 0x16e   :  { %v467_v31 = vunpack.c.l.bf16 %v1372_v27  ;;  %v468_v51 = vunpack.c.h.bf16 %v1372_v27 }
 0x16f   :  { %v1979_v22 = vadd.f32 %v460_v15, %v459_v18  ;;  %v448_v23 = vadd.f32 %v1462_v59, %v447_v30 }
 0x171   :  { %1465 = vtanh.f32 %v1979_v22  ;;  %v452_v47 = vsel %vm451_vm6, %v1462_v59, %v448_v23  ;;  %v1373_v59 = vld [vmem:[%s2171_s0 + $0x28] sm:$0xff] }
 0x172   :  { %v457_v29 = vsel %vm454_vm7, %v456_v48, %v452_v47  ;;  %v470_v63 = vunpack.c.h.bf16 %v1373_v59  ;;  %v469_v43 = vunpack.c.l.bf16 %v1373_v59 }
 0x177   :  { %v1466_v35 = vpop.eup %1465 }
 0x178   :  { %v463_v49 = vmul.f32 %v1466_v35, %v457_v29 }
 0x17a   :  { %v471_v50 = vpack.c.bf16 %v463_v49, %v463_v49 }
 0x17c   :  { %480 = vmatmul.bf16.vlgmr.msra.gmra.mxu0 %v471_v50  ;;  %493 = vmatmul.bf16.vlgmr.msra.gmra.mxu1 %v471_v50 }
 0x17d   :  { %506 = vmatmul.bf16.vlgmr.msra.gmra.mxu2 %v471_v50  ;;  %519 = vmatmul.bf16.vlgmr.msra.gmra.mxu3 %v471_v50 }
 0x17e   :  { %726 = vmatpush.bf16.msra.mxu0 %v1588_v3  ;;  %739 = vmatpush.bf16.msra.mxu1 %v1599_v7 }
 0x17f   :  { %752 = vmatpush.bf16.msra.mxu2 %v1639_v21  ;;  %765 = vmatpush.bf16.msra.mxu3 %v1601_v8 }
 0x182   :  { %727 = vmatpush.bf16.msra.mxu0 %v1613_v12  ;;  %740 = vmatpush.bf16.msra.mxu1 %v1626_v16 }
 0x183   :  { %753 = vmatpush.bf16.msra.mxu2 %v1678_v34  ;;  %766 = vmatpush.bf16.msra.mxu3 %v1628_v17 }
 0x186   :  { %728 = vmatpush.bf16.msra.mxu0 %v1661_v28  ;;  %741 = vmatpush.bf16.msra.mxu1 %v1674_v32 }
 0x187   :  { %754 = vmatpush.bf16.msra.mxu2 %v1702_v42  ;;  %767 = vmatpush.bf16.msra.mxu3 %v1676_v33 }
 0x18a   :  { %729 = vmatpush.bf16.msra.mxu0 %v1700_v41  ;;  %742 = vmatpush.bf16.msra.mxu1 %v1712_v45 }
 0x18b   :  { %755 = vmatpush.bf16.msra.mxu2 %v1738_v54  ;;  %768 = vmatpush.bf16.msra.mxu3 %v1714_v46 }
 0x18e   :  { %730 = vmatpush.bf16.msra.mxu0 %v1736_v53  ;;  %743 = vmatpush.bf16.msra.mxu1 %v1748_v57 }
 0x18f   :  { %756 = vmatpush.bf16.msra.mxu2 %v1774_v2  ;;  %769 = vmatpush.bf16.msra.mxu3 %v1750_v58 }
 0x192   :  { %731 = vmatpush.bf16.msra.mxu0 %v1772_v1  ;;  %744 = vmatpush.bf16.msra.mxu1 %v1784_v6 }
 0x193   :  { %757 = vmatpush.bf16.msra.mxu2 %v1810_v20  ;;  %770 = vmatpush.bf16.msra.mxu3 %v1786_v9 }
 0x196   :  { %732 = vmatpush.bf16.msra.mxu0 %v1808_v19  ;;  %745 = vmatpush.bf16.msra.mxu1 %v1820_v24 }
 0x197   :  { %758 = vmatpush.bf16.msra.mxu2 %v1846_v37  ;;  %771 = vmatpush.bf16.msra.mxu3 %v1822_v25 }
 0x19a   :  { %733 = vmatpush.bf16.msra.mxu0 %v1844_v36  ;;  %746 = vmatpush.bf16.msra.mxu1 %v1850_v38 }
 0x19b   :  { %759 = vmatpush.bf16.msra.mxu2 %v1864_v44  ;;  %772 = vmatpush.bf16.msra.mxu3 %v1852_v39 }
 0x1f9   :  { %v481_v52 = vpop.f32.mrf.mxu0  ;;  %v494_v55 = vpop.f32.mrf.mxu1 }
 0x1fa   :  { %v524_v56 = vadd.f32 %v481_v52, %v467_v31  ;;  %v525_v60 = vadd.f32 %v494_v55, %v468_v51 }
 0x1fc   :  { %v1374_v61 = vmul.f32 -1.442695, %v524_v56  ;;  %v1375_v62 = vmul.f32 -1.442695, %v525_v60 }
 0x1fe   :  { %1467 = vpow2.f32 %v1374_v61 }
 0x1ff   :  { %1469 = vpow2.f32 %v1375_v62 }
 0x200   :  { %v507_v0 = vpop.f32.mrf.mxu2  ;;  %v520_v4 = vpop.f32.mrf.mxu3 }
 0x201   :  { %v527_v5 = vadd.f32 %v520_v4, %v470_v63  ;;  %v483_v10 = vpop.f32.mrf.mxu0  ;;  %v496_v11 = vpop.f32.mrf.mxu1  ;;  %v526_v35 = vadd.f32 %v507_v0, %v469_v43 }
 0x203   :  { %v1376_v13 = vmul.f32 -1.442695, %v527_v5 }
 0x204   :  { %v1468_v14 = vpop.eup %1467 }
 0x205   :  { %v1470_v26 = vpop.eup %1469  ;;  %v531_v15 = vadd.f32 1.0, %v1468_v14  ;;  %1471 = vpow2.f32 %v1376_v13 }
 0x206   :  { %v550_v18 = vadd.f32 1.0, %v1470_v26 }
 0x207   :  { %1473 = vrcp.f32 %v531_v15  ;;  %v543_v51 = vand.u32 2147483648, %v531_v15  ;;  %v541_v56 = vand.u32 2147483647, %v531_v15  ;;  %vm537_vm10 = vweird.f32 %v531_v15 }
 0x208   :  { %1475 = vrcp.f32 %v550_v18  ;;  %v509_v30 = vpop.f32.mrf.mxu2  ;;  %v522_v23 = vpop.f32.mrf.mxu3  ;;  %v562_v52 = vand.u32 2147483648, %v550_v18  ;;  %v560_v61 = vand.u32 2147483647, %v550_v18  ;;  %vm556_vm11 = vweird.f32 %v550_v18 }
 0x209   :  { %v544_v63 = vor.u32 1.1754944e-38, %v543_v51  ;;  %vm542_vm14 = vcmp.eq.f32.partialorder %v541_v56, 8.507059e+37 }
 0x20a   :  { %v563_v5 = vor.u32 1.1754944e-38, %v562_v52  ;;  %vm561_vm15 = vcmp.eq.f32.partialorder %v560_v61, 8.507059e+37 }
 0x20b   :  { %v1472_v40 = vpop.eup %1471 }
 0x20c   :  { %v570_v47 = vadd.f32 1.0, %v1472_v40 }
 0x20d   :  { %v1474_v48 = vpop.eup %1473 }
 0x20e   :  { %v1476_v29 = vpop.eup %1475  ;;  %v533_v49 = vmul.f32 %v1474_v48, %v531_v15  ;;  %1477 = vrcp.f32 %v570_v47  ;;  %vm538_vm8 = vweird.f32 %v1474_v48  ;;  %vm576_vm1 = vweird.f32 %v570_v47 }
 0x20f   :  { %v552_v50 = vmul.f32 %v1476_v29, %v550_v18  ;;  %1479 = vtanh.f32 %v526_v35  ;;  %vm557_vm9 = vweird.f32 %v1476_v29  ;;  %vm539_vm12 = vmor %vm537_vm10, %vm538_vm8  ;;  %v582_v35 = vand.u32 2147483648, %v570_v47 }
 0x210   :  { %v534_v27 = vsub.f32 1.0, %v533_v49  ;;  %vm558_vm13 = vmor %vm556_vm11, %vm557_vm9 }
 0x211   :  { %v553_v31 = vsub.f32 1.0, %v552_v50  ;;  %v583_v50 = vor.u32 1.1754944e-38, %v582_v35 }
 0x212   :  { %v535_v55 = vmul.f32 %v1474_v48, %v534_v27 }
 0x213   :  { %v554_v60 = vmul.f32 %v1476_v29, %v553_v31 }
 0x214   :  { %v1478_v59 = vpop.eup %1477  ;;  %v536_v62 = vadd.f32 %v1474_v48, %v535_v55 }
 0x215   :  { %v555_v0 = vadd.f32 %v1476_v29, %v554_v60  ;;  %v572_v4 = vmul.f32 %v1478_v59, %v570_v47  ;;  %v1480_v11 = vpop.eup %1479  ;;  %vm577_vm0 = vweird.f32 %v1478_v59 }
 0x216   :  { %v540_v10 = vsel %vm539_vm12, %v1474_v48, %v536_v62  ;;  %v580_v48 = vand.u32 2147483647, %v570_v47  ;;  %vm578_vm2 = vmor %vm576_vm1, %vm577_vm0 }
 0x217   :  { %v545_v13 = vsel %vm542_vm14, %v544_v63, %v540_v10  ;;  %v559_v14 = vsel %vm558_vm13, %v1476_v29, %v555_v0  ;;  %v573_v26 = vsub.f32 1.0, %v572_v4 }
 0x218   :  { %v564_v30 = vsel %vm561_vm15, %v563_v5, %v559_v14  ;;  %v587_v23 = vmul.f32 %v1480_v11, %v545_v13  ;;  %vm581_vm3 = vcmp.eq.f32.partialorder %v580_v48, 8.507059e+37 }
 0x219   :  { %v586_v43 = vmul.f32 %v564_v30, %v1979_v22  ;;  %v574_v40 = vmul.f32 %v1478_v59, %v573_v26  ;;  %v1377_v22 = vld [vmem:[%s2171_s0 + $0x30] sm:$0xff] }
 0x21a   :  { %v594_v47 = vunpack.c.l.bf16 %v1377_v22  ;;  %v595_v52 = vunpack.c.h.bf16 %v1377_v22 }
 0x21b   :  { %v2021_v15 = vadd.f32 %v587_v23, %v586_v43  ;;  %v575_v18 = vadd.f32 %v1478_v59, %v574_v40 }
 0x21d   :  { %1481 = vtanh.f32 %v2021_v15  ;;  %v579_v49 = vsel %vm578_vm2, %v1478_v59, %v575_v18  ;;  %v1378_v59 = vld [vmem:[%s2171_s0 + $0x38] sm:$0xff] }
 0x21e   :  { %v584_v27 = vsel %vm581_vm3, %v583_v50, %v579_v49  ;;  %v597_v0 = vunpack.c.h.bf16 %v1378_v59  ;;  %v596_v35 = vunpack.c.l.bf16 %v1378_v59 }
 0x223   :  { %v1482_v29 = vpop.eup %1481 }
 0x224   :  { %v590_v31 = vmul.f32 %v1482_v29, %v584_v27 }
 0x226   :  { %v598_v51 = vpack.c.bf16 %v590_v31, %v590_v31 }
 0x228   :  { %607 = vmatmul.bf16.vlgmr.msrb.gmra.mxu0 %v598_v51  ;;  %620 = vmatmul.bf16.vlgmr.msrb.gmra.mxu1 %v598_v51 }
 0x229   :  { %633 = vmatmul.bf16.vlgmr.msrb.gmra.mxu2 %v598_v51  ;;  %646 = vmatmul.bf16.vlgmr.msrb.gmra.mxu3 %v598_v51 }
 0x22a   :  { %853 = vmatpush.bf16.msrb.mxu0 %v1588_v3  ;;  %866 = vmatpush.bf16.msrb.mxu1 %v1599_v7 }
 0x22b   :  { %879 = vmatpush.bf16.msrb.mxu2 %v1639_v21  ;;  %892 = vmatpush.bf16.msrb.mxu3 %v1601_v8 }
 0x22e   :  { %854 = vmatpush.bf16.msrb.mxu0 %v1613_v12  ;;  %867 = vmatpush.bf16.msrb.mxu1 %v1626_v16 }
 0x22f   :  { %880 = vmatpush.bf16.msrb.mxu2 %v1678_v34  ;;  %893 = vmatpush.bf16.msrb.mxu3 %v1628_v17 }
 0x232   :  { %855 = vmatpush.bf16.msrb.mxu0 %v1661_v28  ;;  %868 = vmatpush.bf16.msrb.mxu1 %v1674_v32 }
 0x233   :  { %881 = vmatpush.bf16.msrb.mxu2 %v1702_v42  ;;  %894 = vmatpush.bf16.msrb.mxu3 %v1676_v33 }
 0x236   :  { %856 = vmatpush.bf16.msrb.mxu0 %v1700_v41  ;;  %869 = vmatpush.bf16.msrb.mxu1 %v1712_v45 }
 0x237   :  { %882 = vmatpush.bf16.msrb.mxu2 %v1738_v54  ;;  %895 = vmatpush.bf16.msrb.mxu3 %v1714_v46 }
 0x23a   :  { %857 = vmatpush.bf16.msrb.mxu0 %v1736_v53  ;;  %870 = vmatpush.bf16.msrb.mxu1 %v1748_v57 }
 0x23b   :  { %883 = vmatpush.bf16.msrb.mxu2 %v1774_v2  ;;  %896 = vmatpush.bf16.msrb.mxu3 %v1750_v58 }
 0x23e   :  { %858 = vmatpush.bf16.msrb.mxu0 %v1772_v1  ;;  %871 = vmatpush.bf16.msrb.mxu1 %v1784_v6 }
 0x23f   :  { %884 = vmatpush.bf16.msrb.mxu2 %v1810_v20  ;;  %897 = vmatpush.bf16.msrb.mxu3 %v1786_v9 }
 0x242   :  { %859 = vmatpush.bf16.msrb.mxu0 %v1808_v19  ;;  %872 = vmatpush.bf16.msrb.mxu1 %v1820_v24 }
 0x243   :  { %885 = vmatpush.bf16.msrb.mxu2 %v1846_v37  ;;  %898 = vmatpush.bf16.msrb.mxu3 %v1822_v25 }
 0x246   :  { %860 = vmatpush.bf16.msrb.mxu0 %v1844_v36  ;;  %873 = vmatpush.bf16.msrb.mxu1 %v1850_v38 }
 0x247   :  { %886 = vmatpush.bf16.msrb.mxu2 %v1864_v44  ;;  %899 = vmatpush.bf16.msrb.mxu3 %v1852_v39 }
 0x2a5   :  { %v608_v55 = vpop.f32.mrf.mxu0  ;;  %v621_v56 = vpop.f32.mrf.mxu1 }
 0x2a6   :  { %v651_v60 = vadd.f32 %v608_v55, %v594_v47  ;;  %v652_v61 = vadd.f32 %v621_v56, %v595_v52 }
 0x2a8   :  { %v1379_v62 = vmul.f32 -1.442695, %v651_v60  ;;  %v1380_v63 = vmul.f32 -1.442695, %v652_v61 }
 0x2aa   :  { %1483 = vpow2.f32 %v1379_v62 }
 0x2ab   :  { %1485 = vpow2.f32 %v1380_v63 }
 0x2ac   :  { %v634_v4 = vpop.f32.mrf.mxu2  ;;  %v647_v5 = vpop.f32.mrf.mxu3 }
 0x2ad   :  { %v654_v10 = vadd.f32 %v647_v5, %v597_v0  ;;  %v610_v11 = vpop.f32.mrf.mxu0  ;;  %v623_v13 = vpop.f32.mrf.mxu1  ;;  %v653_v29 = vadd.f32 %v634_v4, %v596_v35 }
 0x2af   :  { %v1381_v14 = vmul.f32 -1.442695, %v654_v10 }
 0x2b0   :  { %v1484_v26 = vpop.eup %1483 }
 0x2b1   :  { %v1486_v30 = vpop.eup %1485  ;;  %v658_v23 = vadd.f32 1.0, %v1484_v26  ;;  %1487 = vpow2.f32 %v1381_v14 }
 0x2b2   :  { %v677_v43 = vadd.f32 1.0, %v1486_v30 }
 0x2b3   :  { %1489 = vrcp.f32 %v658_v23  ;;  %v670_v52 = vand.u32 2147483648, %v658_v23  ;;  %v668_v60 = vand.u32 2147483647, %v658_v23  ;;  %vm664_vm6 = vweird.f32 %v658_v23 }
 0x2b4   :  { %1491 = vrcp.f32 %v677_v43  ;;  %v636_v40 = vpop.f32.mrf.mxu2  ;;  %v649_v18 = vpop.f32.mrf.mxu3  ;;  %v689_v55 = vand.u32 2147483648, %v677_v43  ;;  %v687_v62 = vand.u32 2147483647, %v677_v43  ;;  %vm683_vm7 = vweird.f32 %v677_v43 }
 0x2b5   :  { %v671_v0 = vor.u32 1.1754944e-38, %v670_v52  ;;  %vm669_vm10 = vcmp.eq.f32.partialorder %v668_v60, 8.507059e+37 }
 0x2b6   :  { %v690_v10 = vor.u32 1.1754944e-38, %v689_v55  ;;  %vm688_vm11 = vcmp.eq.f32.partialorder %v687_v62, 8.507059e+37 }
 0x2b7   :  { %v1488_v48 = vpop.eup %1487 }
 0x2b8   :  { %v697_v49 = vadd.f32 1.0, %v1488_v48 }
 0x2b9   :  { %v1490_v50 = vpop.eup %1489 }
 0x2ba   :  { %v1492_v27 = vpop.eup %1491  ;;  %v660_v31 = vmul.f32 %v1490_v50, %v658_v23  ;;  %1493 = vrcp.f32 %v697_v49  ;;  %vm665_vm4 = vweird.f32 %v1490_v50  ;;  %vm703_vm13 = vweird.f32 %v697_v49 }
 0x2bb   :  { %v679_v51 = vmul.f32 %v1492_v27, %v677_v43  ;;  %1495 = vtanh.f32 %v653_v29  ;;  %vm684_vm5 = vweird.f32 %v1492_v27  ;;  %vm666_vm8 = vmor %vm664_vm6, %vm665_vm4  ;;  %v709_v29 = vand.u32 2147483648, %v697_v49 }
 0x2bc   :  { %v661_v22 = vsub.f32 1.0, %v660_v31  ;;  %vm685_vm9 = vmor %vm683_vm7, %vm684_vm5 }
 0x2bd   :  { %v680_v47 = vsub.f32 1.0, %v679_v51  ;;  %v710_v51 = vor.u32 1.1754944e-38, %v709_v29 }
 0x2be   :  { %v662_v56 = vmul.f32 %v1490_v50, %v661_v22 }
 0x2bf   :  { %v681_v61 = vmul.f32 %v1492_v27, %v680_v47 }
 0x2c0   :  { %v1494_v59 = vpop.eup %1493  ;;  %v663_v63 = vadd.f32 %v1490_v50, %v662_v56 }
 0x2c1   :  { %v682_v4 = vadd.f32 %v1492_v27, %v681_v61  ;;  %v699_v5 = vmul.f32 %v1494_v59, %v697_v49  ;;  %v1496_v13 = vpop.eup %1495  ;;  %vm704_vm12 = vweird.f32 %v1494_v59 }
 0x2c2   :  { %v667_v11 = vsel %vm666_vm8, %v1490_v50, %v663_v63  ;;  %v707_v50 = vand.u32 2147483647, %v697_v49  ;;  %vm705_vm14 = vmor %vm703_vm13, %vm704_vm12 }
 0x2c3   :  { %v672_v14 = vsel %vm669_vm10, %v671_v0, %v667_v11  ;;  %v686_v26 = vsel %vm685_vm9, %v1492_v27, %v682_v4  ;;  %v700_v30 = vsub.f32 1.0, %v699_v5 }
 0x2c4   :  { %v691_v40 = vsel %vm688_vm11, %v690_v10, %v686_v26  ;;  %v714_v18 = vmul.f32 %v1496_v13, %v672_v14  ;;  %vm708_vm15 = vcmp.eq.f32.partialorder %v707_v50, 8.507059e+37 }
 0x2c5   :  { %v713_v35 = vmul.f32 %v691_v40, %v2021_v15  ;;  %v701_v48 = vmul.f32 %v1494_v59, %v700_v30  ;;  %v1382_v15 = vld [vmem:[%s2171_s0 + $0x40] sm:$0xff] }
 0x2c6   :  { %v721_v49 = vunpack.c.l.bf16 %v1382_v15  ;;  %v722_v55 = vunpack.c.h.bf16 %v1382_v15 }
 0x2c7   :  { %v2063_v23 = vadd.f32 %v714_v18, %v713_v35  ;;  %v702_v43 = vadd.f32 %v1494_v59, %v701_v48 }
 0x2c9   :  { %1497 = vtanh.f32 %v2063_v23  ;;  %v706_v31 = vsel %vm705_vm14, %v1494_v59, %v702_v43  ;;  %v1383_v59 = vld [vmem:[%s2171_s0 + $0x48] sm:$0xff] }
 0x2ca   :  { %v711_v22 = vsel %vm708_vm15, %v710_v51, %v706_v31  ;;  %v724_v4 = vunpack.c.h.bf16 %v1383_v59  ;;  %v723_v29 = vunpack.c.l.bf16 %v1383_v59 }
 0x2cf   :  { %v1498_v27 = vpop.eup %1497 }
 0x2d0   :  { %v717_v47 = vmul.f32 %v1498_v27, %v711_v22 }
 0x2d2   :  { %v725_v52 = vpack.c.bf16 %v717_v47, %v717_v47 }
 0x2d4   :  { %734 = vmatmul.bf16.vlgmr.msra.gmra.mxu0 %v725_v52  ;;  %747 = vmatmul.bf16.vlgmr.msra.gmra.mxu1 %v725_v52 }
 0x2d5   :  { %760 = vmatmul.bf16.vlgmr.msra.gmra.mxu2 %v725_v52  ;;  %773 = vmatmul.bf16.vlgmr.msra.gmra.mxu3 %v725_v52 }
 0x2d6   :  { %980 = vmatpush.bf16.msra.mxu0 %v1588_v3  ;;  %993 = vmatpush.bf16.msra.mxu1 %v1599_v7 }
 0x2d7   :  { %1006 = vmatpush.bf16.msra.mxu2 %v1639_v21  ;;  %1019 = vmatpush.bf16.msra.mxu3 %v1601_v8 }
 0x2da   :  { %981 = vmatpush.bf16.msra.mxu0 %v1613_v12  ;;  %994 = vmatpush.bf16.msra.mxu1 %v1626_v16 }
 0x2db   :  { %1007 = vmatpush.bf16.msra.mxu2 %v1678_v34  ;;  %1020 = vmatpush.bf16.msra.mxu3 %v1628_v17 }
 0x2de   :  { %982 = vmatpush.bf16.msra.mxu0 %v1661_v28  ;;  %995 = vmatpush.bf16.msra.mxu1 %v1674_v32 }
 0x2df   :  { %1008 = vmatpush.bf16.msra.mxu2 %v1702_v42  ;;  %1021 = vmatpush.bf16.msra.mxu3 %v1676_v33 }
 0x2e2   :  { %983 = vmatpush.bf16.msra.mxu0 %v1700_v41  ;;  %996 = vmatpush.bf16.msra.mxu1 %v1712_v45 }
 0x2e3   :  { %1009 = vmatpush.bf16.msra.mxu2 %v1738_v54  ;;  %1022 = vmatpush.bf16.msra.mxu3 %v1714_v46 }
 0x2e6   :  { %984 = vmatpush.bf16.msra.mxu0 %v1736_v53  ;;  %997 = vmatpush.bf16.msra.mxu1 %v1748_v57 }
 0x2e7   :  { %1010 = vmatpush.bf16.msra.mxu2 %v1774_v2  ;;  %1023 = vmatpush.bf16.msra.mxu3 %v1750_v58 }
 0x2ea   :  { %985 = vmatpush.bf16.msra.mxu0 %v1772_v1  ;;  %998 = vmatpush.bf16.msra.mxu1 %v1784_v6 }
 0x2eb   :  { %1011 = vmatpush.bf16.msra.mxu2 %v1810_v20  ;;  %1024 = vmatpush.bf16.msra.mxu3 %v1786_v9 }
 0x2ee   :  { %986 = vmatpush.bf16.msra.mxu0 %v1808_v19  ;;  %999 = vmatpush.bf16.msra.mxu1 %v1820_v24 }
 0x2ef   :  { %1012 = vmatpush.bf16.msra.mxu2 %v1846_v37  ;;  %1025 = vmatpush.bf16.msra.mxu3 %v1822_v25 }
 0x2f2   :  { %987 = vmatpush.bf16.msra.mxu0 %v1844_v36  ;;  %1000 = vmatpush.bf16.msra.mxu1 %v1850_v38 }
 0x2f3   :  { %1013 = vmatpush.bf16.msra.mxu2 %v1864_v44  ;;  %1026 = vmatpush.bf16.msra.mxu3 %v1852_v39 }
 0x351   :  { %v735_v56 = vpop.f32.mrf.mxu0  ;;  %v748_v60 = vpop.f32.mrf.mxu1 }
 0x352   :  { %v778_v61 = vadd.f32 %v735_v56, %v721_v49  ;;  %v779_v62 = vadd.f32 %v748_v60, %v722_v55 }
 0x354   :  { %v1384_v63 = vmul.f32 -1.442695, %v778_v61  ;;  %v1385_v0 = vmul.f32 -1.442695, %v779_v62 }
 0x356   :  { %1499 = vpow2.f32 %v1384_v63 }
 0x357   :  { %1501 = vpow2.f32 %v1385_v0 }
 0x358   :  { %v761_v5 = vpop.f32.mrf.mxu2  ;;  %v774_v10 = vpop.f32.mrf.mxu3 }
 0x359   :  { %v781_v11 = vadd.f32 %v774_v10, %v724_v4  ;;  %v737_v13 = vpop.f32.mrf.mxu0  ;;  %v750_v14 = vpop.f32.mrf.mxu1  ;;  %v780_v27 = vadd.f32 %v761_v5, %v723_v29 }
 0x35b   :  { %v1386_v26 = vmul.f32 -1.442695, %v781_v11 }
 0x35c   :  { %v1500_v30 = vpop.eup %1499 }
 0x35d   :  { %v1502_v40 = vpop.eup %1501  ;;  %v785_v18 = vadd.f32 1.0, %v1500_v30  ;;  %1503 = vpow2.f32 %v1386_v26 }
 0x35e   :  { %v804_v35 = vadd.f32 1.0, %v1502_v40 }
 0x35f   :  { %1505 = vrcp.f32 %v785_v18  ;;  %v797_v55 = vand.u32 2147483648, %v785_v18  ;;  %v795_v61 = vand.u32 2147483647, %v785_v18  ;;  %vm791_vm2 = vweird.f32 %v785_v18 }
 0x360   :  { %1507 = vrcp.f32 %v804_v35  ;;  %v763_v48 = vpop.f32.mrf.mxu2  ;;  %v776_v43 = vpop.f32.mrf.mxu3  ;;  %v816_v56 = vand.u32 2147483648, %v804_v35  ;;  %v814_v63 = vand.u32 2147483647, %v804_v35  ;;  %vm810_vm3 = vweird.f32 %v804_v35 }
 0x361   :  { %v798_v4 = vor.u32 1.1754944e-38, %v797_v55  ;;  %vm796_vm6 = vcmp.eq.f32.partialorder %v795_v61, 8.507059e+37 }
 0x362   :  { %v817_v11 = vor.u32 1.1754944e-38, %v816_v56  ;;  %vm815_vm7 = vcmp.eq.f32.partialorder %v814_v63, 8.507059e+37 }
 0x363   :  { %v1504_v50 = vpop.eup %1503 }
 0x364   :  { %v824_v31 = vadd.f32 1.0, %v1504_v50 }
 0x365   :  { %v1506_v51 = vpop.eup %1505 }
 0x366   :  { %v1508_v22 = vpop.eup %1507  ;;  %v787_v47 = vmul.f32 %v1506_v51, %v785_v18  ;;  %1509 = vrcp.f32 %v824_v31  ;;  %vm792_vm0 = vweird.f32 %v1506_v51  ;;  %vm830_vm9 = vweird.f32 %v824_v31 }
 0x367   :  { %v806_v52 = vmul.f32 %v1508_v22, %v804_v35  ;;  %1511 = vtanh.f32 %v780_v27  ;;  %vm811_vm1 = vweird.f32 %v1508_v22  ;;  %vm793_vm4 = vmor %vm791_vm2, %vm792_vm0  ;;  %v836_v27 = vand.u32 2147483648, %v824_v31 }
 0x368   :  { %v788_v15 = vsub.f32 1.0, %v787_v47  ;;  %vm812_vm5 = vmor %vm810_vm3, %vm811_vm1 }
 0x369   :  { %v807_v49 = vsub.f32 1.0, %v806_v52  ;;  %v837_v52 = vor.u32 1.1754944e-38, %v836_v27 }
 0x36a   :  { %v789_v60 = vmul.f32 %v1506_v51, %v788_v15 }
 0x36b   :  { %v808_v62 = vmul.f32 %v1508_v22, %v807_v49 }
 0x36c   :  { %v1510_v59 = vpop.eup %1509  ;;  %v790_v0 = vadd.f32 %v1506_v51, %v789_v60 }
 0x36d   :  { %v809_v5 = vadd.f32 %v1508_v22, %v808_v62  ;;  %v826_v10 = vmul.f32 %v1510_v59, %v824_v31  ;;  %v1512_v14 = vpop.eup %1511  ;;  %vm831_vm8 = vweird.f32 %v1510_v59 }
 0x36e   :  { %v794_v13 = vsel %vm793_vm4, %v1506_v51, %v790_v0  ;;  %v834_v51 = vand.u32 2147483647, %v824_v31  ;;  %vm832_vm10 = vmor %vm830_vm9, %vm831_vm8 }
 0x36f   :  { %v799_v26 = vsel %vm796_vm6, %v798_v4, %v794_v13  ;;  %v813_v30 = vsel %vm812_vm5, %v1508_v22, %v809_v5  ;;  %v827_v40 = vsub.f32 1.0, %v826_v10 }
 0x370   :  { %v818_v48 = vsel %vm815_vm7, %v817_v11, %v813_v30  ;;  %v841_v43 = vmul.f32 %v1512_v14, %v799_v26  ;;  %vm835_vm11 = vcmp.eq.f32.partialorder %v834_v51, 8.507059e+37 }
 0x371   :  { %v840_v29 = vmul.f32 %v818_v48, %v2063_v23  ;;  %v828_v50 = vmul.f32 %v1510_v59, %v827_v40 }
 0x373   :  { %v2105_v18 = vadd.f32 %v841_v43, %v840_v29  ;;  %v829_v35 = vadd.f32 %v1510_v59, %v828_v50 }
 0x375   :  { %1513 = vtanh.f32 %v2105_v18  ;;  %v833_v47 = vsel %vm832_vm10, %v1510_v59, %v829_v35 }
 0x376   :  { %v838_v15 = vsel %vm835_vm11, %v837_v52, %v833_v47 }
 0x37b   :  { %v1514_v22 = vpop.eup %1513 }
 0x37c   :  { %v844_v49 = vmul.f32 %v1514_v22, %v838_v15 }
 0x37e   :  { %v852_v55 = vpack.c.bf16 %v844_v49, %v844_v49 }
 0x380   :  { %861 = vmatmul.bf16.vlgmr.msrb.gmra.mxu0 %v852_v55  ;;  %874 = vmatmul.bf16.vlgmr.msrb.gmra.mxu1 %v852_v55 }
 0x381   :  { %887 = vmatmul.bf16.vlgmr.msrb.gmra.mxu2 %v852_v55  ;;  %900 = vmatmul.bf16.vlgmr.msrb.gmra.mxu3 %v852_v55 }
 0x382   :  { %1107 = vmatpush.bf16.msrb.mxu0 %v1588_v3  ;;  %1120 = vmatpush.bf16.msrb.mxu1 %v1599_v7  ;;  %v1387_v3 = vld [vmem:[%s2171_s0 + $0x50] sm:$0xff] }
 0x383   :  { %1133 = vmatpush.bf16.msrb.mxu2 %v1639_v21  ;;  %1146 = vmatpush.bf16.msrb.mxu3 %v1601_v8  ;;  %v848_v7 = vunpack.c.l.bf16 %v1387_v3  ;;  %v849_v8 = vunpack.c.h.bf16 %v1387_v3 }
 0x386   :  { %1108 = vmatpush.bf16.msrb.mxu0 %v1613_v12  ;;  %1121 = vmatpush.bf16.msrb.mxu1 %v1626_v16 }
 0x387   :  { %1134 = vmatpush.bf16.msrb.mxu2 %v1678_v34  ;;  %1147 = vmatpush.bf16.msrb.mxu3 %v1628_v17 }
 0x38a   :  { %1109 = vmatpush.bf16.msrb.mxu0 %v1661_v28  ;;  %1122 = vmatpush.bf16.msrb.mxu1 %v1674_v32  ;;  %v1388_v28 = vld [vmem:[%s2171_s0 + $0x58] sm:$0xff] }
 0x38b   :  { %1135 = vmatpush.bf16.msrb.mxu2 %v1702_v42  ;;  %1148 = vmatpush.bf16.msrb.mxu3 %v1676_v33  ;;  %v851_v34 = vunpack.c.h.bf16 %v1388_v28 }
 0x38e   :  { %1110 = vmatpush.bf16.msrb.mxu0 %v1700_v41  ;;  %1123 = vmatpush.bf16.msrb.mxu1 %v1712_v45 }
 0x38f   :  { %1136 = vmatpush.bf16.msrb.mxu2 %v1738_v54  ;;  %1149 = vmatpush.bf16.msrb.mxu3 %v1714_v46 }
 0x392   :  { %1111 = vmatpush.bf16.msrb.mxu0 %v1736_v53  ;;  %1124 = vmatpush.bf16.msrb.mxu1 %v1748_v57 }
 0x393   :  { %1137 = vmatpush.bf16.msrb.mxu2 %v1774_v2  ;;  %1150 = vmatpush.bf16.msrb.mxu3 %v1750_v58 }
 0x396   :  { %1112 = vmatpush.bf16.msrb.mxu0 %v1772_v1  ;;  %1125 = vmatpush.bf16.msrb.mxu1 %v1784_v6 }
 0x397   :  { %1138 = vmatpush.bf16.msrb.mxu2 %v1810_v20  ;;  %1151 = vmatpush.bf16.msrb.mxu3 %v1786_v9 }
 0x39a   :  { %1113 = vmatpush.bf16.msrb.mxu0 %v1808_v19  ;;  %1126 = vmatpush.bf16.msrb.mxu1 %v1820_v24  ;;  %v850_v19 = vunpack.c.l.bf16 %v1388_v28  ;;  %v1393_v28 = vld [vmem:[%s2171_s0 + $0x68] sm:$0xff] }
 0x39b   :  { %1139 = vmatpush.bf16.msrb.mxu2 %v1846_v37  ;;  %1152 = vmatpush.bf16.msrb.mxu3 %v1822_v25 }
 0x39e   :  { %1114 = vmatpush.bf16.msrb.mxu0 %v1844_v36  ;;  %1127 = vmatpush.bf16.msrb.mxu1 %v1850_v38 }
 0x39f   :  { %1140 = vmatpush.bf16.msrb.mxu2 %v1864_v44  ;;  %1153 = vmatpush.bf16.msrb.mxu3 %v1852_v39 }
 0x3fd   :  { %v862_v12 = vpop.f32.mrf.mxu0  ;;  %v875_v16 = vpop.f32.mrf.mxu1 }
 0x3fe   :  { %v905_v17 = vadd.f32 %v862_v12, %v848_v7  ;;  %v906_v21 = vadd.f32 %v875_v16, %v849_v8 }
 0x400   :  { %v1389_v32 = vmul.f32 -1.442695, %v905_v17  ;;  %v1390_v33 = vmul.f32 -1.442695, %v906_v21 }
 0x402   :  { %1515 = vpow2.f32 %v1389_v32 }
 0x403   :  { %1517 = vpow2.f32 %v1390_v33 }
 0x404   :  { %v888_v41 = vpop.f32.mrf.mxu2  ;;  %v901_v42 = vpop.f32.mrf.mxu3 }
 0x405   :  { %v908_v45 = vadd.f32 %v901_v42, %v851_v34  ;;  %v864_v46 = vpop.f32.mrf.mxu0  ;;  %v877_v53 = vpop.f32.mrf.mxu1  ;;  %v907_v36 = vadd.f32 %v888_v41, %v850_v19  ;;  %v978_v34 = vunpack.c.h.bf16 %v1393_v28  ;;  %v977_v19 = vunpack.c.l.bf16 %v1393_v28  ;;  %v1398_v28 = vld [vmem:[%s2171_s0 + $0x78] sm:$0xff] }
 0x407   :  { %v1391_v54 = vmul.f32 -1.442695, %v908_v45 }
 0x408   :  { %v1516_v57 = vpop.eup %1515 }
 0x409   :  { %v1518_v58 = vpop.eup %1517  ;;  %v912_v1 = vadd.f32 1.0, %v1516_v57  ;;  %1519 = vpow2.f32 %v1391_v54 }
 0x40a   :  { %v931_v2 = vadd.f32 1.0, %v1518_v58 }
 0x40b   :  { %1521 = vrcp.f32 %v912_v1  ;;  %v924_v31 = vand.u32 2147483648, %v912_v1  ;;  %v922_v61 = vand.u32 2147483647, %v912_v1  ;;  %vm918_vm14 = vweird.f32 %v912_v1 }
 0x40c   :  { %1523 = vrcp.f32 %v931_v2  ;;  %v890_v6 = vpop.f32.mrf.mxu2  ;;  %v903_v9 = vpop.f32.mrf.mxu3  ;;  %v943_v56 = vand.u32 2147483648, %v931_v2  ;;  %v941_v63 = vand.u32 2147483647, %v931_v2  ;;  %vm937_vm15 = vweird.f32 %v931_v2 }
 0x40d   :  { %v925_v4 = vor.u32 1.1754944e-38, %v924_v31  ;;  %vm923_vm2 = vcmp.eq.f32.partialorder %v922_v61, 8.507059e+37 }
 0x40e   :  { %v944_v11 = vor.u32 1.1754944e-38, %v943_v56  ;;  %vm942_vm3 = vcmp.eq.f32.partialorder %v941_v63, 8.507059e+37 }
 0x40f   :  { %v1520_v20 = vpop.eup %1519 }
 0x410   :  { %v951_v24 = vadd.f32 1.0, %v1520_v20 }
 0x411   :  { %v1522_v25 = vpop.eup %1521 }
 0x412   :  { %v1524_v37 = vpop.eup %1523  ;;  %v914_v38 = vmul.f32 %v1522_v25, %v912_v1  ;;  %1525 = vrcp.f32 %v951_v24  ;;  %vm919_vm12 = vweird.f32 %v1522_v25  ;;  %v963_v51 = vand.u32 2147483648, %v951_v24 }
 0x413   :  { %v933_v39 = vmul.f32 %v1524_v37, %v931_v2  ;;  %1527 = vtanh.f32 %v907_v36  ;;  %vm938_vm13 = vweird.f32 %v1524_v37  ;;  %vm920_vm0 = vmor %vm918_vm14, %vm919_vm12  ;;  %vm957_vm5 = vweird.f32 %v951_v24 }
 0x414   :  { %v915_v44 = vsub.f32 1.0, %v914_v38  ;;  %vm939_vm1 = vmor %vm937_vm15, %vm938_vm13  ;;  %v961_v47 = vand.u32 2147483647, %v951_v24  ;;  %v964_v22 = vor.u32 1.1754944e-38, %v963_v51 }
 0x415   :  { %v934_v23 = vsub.f32 1.0, %v933_v39 }
 0x416   :  { %v916_v60 = vmul.f32 %v1522_v25, %v915_v44  ;;  %vm962_vm7 = vcmp.eq.f32.partialorder %v961_v47, 8.507059e+37 }
 0x417   :  { %v935_v62 = vmul.f32 %v1524_v37, %v934_v23 }
 0x418   :  { %v1526_v59 = vpop.eup %1525  ;;  %v917_v0 = vadd.f32 %v1522_v25, %v916_v60 }
 0x419   :  { %v936_v5 = vadd.f32 %v1524_v37, %v935_v62  ;;  %v953_v10 = vmul.f32 %v1526_v59, %v951_v24  ;;  %v1528_v14 = vpop.eup %1527  ;;  %vm958_vm4 = vweird.f32 %v1526_v59 }
 0x41a   :  { %v921_v13 = vsel %vm920_vm0, %v1522_v25, %v917_v0  ;;  %vm959_vm6 = vmor %vm957_vm5, %vm958_vm4 }
 0x41b   :  { %v926_v26 = vsel %vm923_vm2, %v925_v4, %v921_v13  ;;  %v940_v30 = vsel %vm939_vm1, %v1524_v37, %v936_v5  ;;  %v954_v40 = vsub.f32 1.0, %v953_v10 }
 0x41c   :  { %v945_v48 = vsel %vm942_vm3, %v944_v11, %v940_v30  ;;  %v968_v43 = vmul.f32 %v1528_v14, %v926_v26 }
 0x41d   :  { %v967_v29 = vmul.f32 %v945_v48, %v2105_v18  ;;  %v955_v50 = vmul.f32 %v1526_v59, %v954_v40  ;;  %v1392_v18 = vld [vmem:[%s2171_s0 + $0x60] sm:$0xff] }
 0x41e   :  { %v975_v7 = vunpack.c.l.bf16 %v1392_v18  ;;  %v976_v8 = vunpack.c.h.bf16 %v1392_v18 }
 0x41f   :  { %v2147_v35 = vadd.f32 %v968_v43, %v967_v29  ;;  %v956_v27 = vadd.f32 %v1526_v59, %v955_v50 }
 0x421   :  { %1529 = vtanh.f32 %v2147_v35  ;;  %v960_v52 = vsel %vm959_vm6, %v1526_v59, %v956_v27 }
 0x422   :  { %v965_v49 = vsel %vm962_vm7, %v964_v22, %v960_v52 }
 0x427   :  { %v1530_v15 = vpop.eup %1529 }
 0x428   :  { %v971_v55 = vmul.f32 %v1530_v15, %v965_v49 }
 0x42a   :  { %v979_v3 = vpack.c.bf16 %v971_v55, %v971_v55 }
 0x42c   :  { %988 = vmatmul.bf16.vlgmr.msra.gmra.mxu0 %v979_v3  ;;  %1001 = vmatmul.bf16.vlgmr.msra.gmra.mxu1 %v979_v3 }
 0x42d   :  { %1014 = vmatmul.bf16.vlgmr.msra.gmra.mxu2 %v979_v3  ;;  %1027 = vmatmul.bf16.vlgmr.msra.gmra.mxu3 %v979_v3 }
 0x4a9   :  { %v989_v12 = vpop.f32.mrf.mxu0  ;;  %v1002_v16 = vpop.f32.mrf.mxu1 }
 0x4aa   :  { %v1032_v17 = vadd.f32 %v989_v12, %v975_v7  ;;  %v1033_v21 = vadd.f32 %v1002_v16, %v976_v8 }
 0x4ac   :  { %v1394_v32 = vmul.f32 -1.442695, %v1032_v17  ;;  %v1395_v33 = vmul.f32 -1.442695, %v1033_v21 }
 0x4ae   :  { %1531 = vpow2.f32 %v1394_v32 }
 0x4af   :  { %1533 = vpow2.f32 %v1395_v33 }
 0x4b0   :  { %v1015_v41 = vpop.f32.mrf.mxu2  ;;  %v1028_v42 = vpop.f32.mrf.mxu3 }
 0x4b1   :  { %v1035_v45 = vadd.f32 %v1028_v42, %v978_v34  ;;  %v991_v46 = vpop.f32.mrf.mxu0  ;;  %v1004_v53 = vpop.f32.mrf.mxu1  ;;  %v1034_v36 = vadd.f32 %v1015_v41, %v977_v19  ;;  %v1105_v34 = vunpack.c.h.bf16 %v1398_v28  ;;  %v1104_v19 = vunpack.c.l.bf16 %v1398_v28 }
 0x4b3   :  { %v1396_v54 = vmul.f32 -1.442695, %v1035_v45 }
 0x4b4   :  { %v1532_v57 = vpop.eup %1531 }
 0x4b5   :  { %v1534_v58 = vpop.eup %1533  ;;  %v1039_v1 = vadd.f32 1.0, %v1532_v57  ;;  %1535 = vpow2.f32 %v1396_v54 }
 0x4b6   :  { %v1058_v2 = vadd.f32 1.0, %v1534_v58 }
 0x4b7   :  { %1537 = vrcp.f32 %v1039_v1  ;;  %v1051_v31 = vand.u32 2147483648, %v1039_v1  ;;  %v1049_v61 = vand.u32 2147483647, %v1039_v1  ;;  %vm1045_vm10 = vweird.f32 %v1039_v1 }
 0x4b8   :  { %1539 = vrcp.f32 %v1058_v2  ;;  %v1017_v6 = vpop.f32.mrf.mxu2  ;;  %v1030_v9 = vpop.f32.mrf.mxu3  ;;  %v1070_v56 = vand.u32 2147483648, %v1058_v2  ;;  %v1068_v63 = vand.u32 2147483647, %v1058_v2  ;;  %vm1064_vm11 = vweird.f32 %v1058_v2 }
 0x4b9   :  { %v1052_v4 = vor.u32 1.1754944e-38, %v1051_v31  ;;  %vm1050_vm14 = vcmp.eq.f32.partialorder %v1049_v61, 8.507059e+37 }
 0x4ba   :  { %v1071_v11 = vor.u32 1.1754944e-38, %v1070_v56  ;;  %vm1069_vm15 = vcmp.eq.f32.partialorder %v1068_v63, 8.507059e+37 }
 0x4bb   :  { %v1536_v20 = vpop.eup %1535 }
 0x4bc   :  { %v1078_v24 = vadd.f32 1.0, %v1536_v20 }
 0x4bd   :  { %v1538_v25 = vpop.eup %1537 }
 0x4be   :  { %v1540_v37 = vpop.eup %1539  ;;  %v1041_v38 = vmul.f32 %v1538_v25, %v1039_v1  ;;  %1541 = vrcp.f32 %v1078_v24  ;;  %vm1046_vm8 = vweird.f32 %v1538_v25  ;;  %v1090_v47 = vand.u32 2147483648, %v1078_v24 }
 0x4bf   :  { %v1060_v39 = vmul.f32 %v1540_v37, %v1058_v2  ;;  %1543 = vtanh.f32 %v1034_v36  ;;  %vm1065_vm9 = vweird.f32 %v1540_v37  ;;  %vm1047_vm12 = vmor %vm1045_vm10, %vm1046_vm8  ;;  %vm1084_vm1 = vweird.f32 %v1078_v24 }
 0x4c0   :  { %v1042_v44 = vsub.f32 1.0, %v1041_v38  ;;  %vm1066_vm13 = vmor %vm1064_vm11, %vm1065_vm9  ;;  %v1088_v52 = vand.u32 2147483647, %v1078_v24  ;;  %v1091_v15 = vor.u32 1.1754944e-38, %v1090_v47 }
 0x4c1   :  { %v1061_v23 = vsub.f32 1.0, %v1060_v39 }
 0x4c2   :  { %v1043_v60 = vmul.f32 %v1538_v25, %v1042_v44  ;;  %vm1089_vm3 = vcmp.eq.f32.partialorder %v1088_v52, 8.507059e+37 }
 0x4c3   :  { %v1062_v62 = vmul.f32 %v1540_v37, %v1061_v23 }
 0x4c4   :  { %v1542_v59 = vpop.eup %1541  ;;  %v1044_v0 = vadd.f32 %v1538_v25, %v1043_v60 }
 0x4c5   :  { %v1063_v5 = vadd.f32 %v1540_v37, %v1062_v62  ;;  %v1080_v10 = vmul.f32 %v1542_v59, %v1078_v24  ;;  %v1544_v14 = vpop.eup %1543  ;;  %vm1085_vm0 = vweird.f32 %v1542_v59 }
 0x4c6   :  { %v1048_v13 = vsel %vm1047_vm12, %v1538_v25, %v1044_v0  ;;  %vm1086_vm2 = vmor %vm1084_vm1, %vm1085_vm0 }
 0x4c7   :  { %v1053_v26 = vsel %vm1050_vm14, %v1052_v4, %v1048_v13  ;;  %v1067_v30 = vsel %vm1066_vm13, %v1540_v37, %v1063_v5  ;;  %v1081_v40 = vsub.f32 1.0, %v1080_v10 }
 0x4c8   :  { %v1072_v48 = vsel %vm1069_vm15, %v1071_v11, %v1067_v30  ;;  %v1095_v43 = vmul.f32 %v1544_v14, %v1053_v26 }
 0x4c9   :  { %v1094_v29 = vmul.f32 %v1072_v48, %v2147_v35  ;;  %v1082_v50 = vmul.f32 %v1542_v59, %v1081_v40  ;;  %v1397_v35 = vld [vmem:[%s2171_s0 + $0x70] sm:$0xff] }
 0x4ca   :  { %v1102_v7 = vunpack.c.l.bf16 %v1397_v35  ;;  %v1103_v8 = vunpack.c.h.bf16 %v1397_v35 }
 0x4cb   :  { %v2157_v27 = vadd.f32 %v1095_v43, %v1094_v29  ;;  %v1083_v51 = vadd.f32 %v1542_v59, %v1082_v50 }
 0x4cd   :  { %1545 = vtanh.f32 %v2157_v27  ;;  %v1087_v22 = vsel %vm1086_vm2, %v1542_v59, %v1083_v51 }
 0x4ce   :  { %v1092_v55 = vsel %vm1089_vm3, %v1091_v15, %v1087_v22 }
 0x4d3   :  { %v1546_v49 = vpop.eup %1545 }
 0x4d4   :  { %v1098_v3 = vmul.f32 %v1546_v49, %v1092_v55 }
 0x4d6   :  { %v1106_v18 = vpack.c.bf16 %v1098_v3, %v1098_v3 }
 0x4d8   :  { %1115 = vmatmul.bf16.vlgmr.msrb.gmra.mxu0 %v1106_v18  ;;  %1128 = vmatmul.bf16.vlgmr.msrb.gmra.mxu1 %v1106_v18 }
 0x4d9   :  { %1141 = vmatmul.bf16.vlgmr.msrb.gmra.mxu2 %v1106_v18  ;;  %1154 = vmatmul.bf16.vlgmr.msrb.gmra.mxu3 %v1106_v18 }
 0x555   :  { %v1116_v12 = vpop.f32.mrf.mxu0  ;;  %v1129_v16 = vpop.f32.mrf.mxu1 }
 0x556   :  { %v1159_v17 = vadd.f32 %v1116_v12, %v1102_v7  ;;  %v1160_v21 = vadd.f32 %v1129_v16, %v1103_v8 }
 0x558   :  { %v1399_v32 = vmul.f32 -1.442695, %v1159_v17  ;;  %v1400_v33 = vmul.f32 -1.442695, %v1160_v21 }
 0x55a   :  { %1547 = vpow2.f32 %v1399_v32 }
 0x55b   :  { %1549 = vpow2.f32 %v1400_v33 }
 0x55c   :  { %v1142_v41 = vpop.f32.mrf.mxu2  ;;  %v1155_v42 = vpop.f32.mrf.mxu3 }
 0x55d   :  { %v1162_v45 = vadd.f32 %v1155_v42, %v1105_v34  ;;  %v1118_v46 = vpop.f32.mrf.mxu0  ;;  %v1131_v53 = vpop.f32.mrf.mxu1  ;;  %v1161_v36 = vadd.f32 %v1142_v41, %v1104_v19 }
 0x55f   :  { %v1401_v54 = vmul.f32 -1.442695, %v1162_v45 }
 0x560   :  { %v1548_v57 = vpop.eup %1547 }
 0x561   :  { %v1550_v58 = vpop.eup %1549  ;;  %v1166_v1 = vadd.f32 1.0, %v1548_v57  ;;  %1551 = vpow2.f32 %v1401_v54 }
 0x562   :  { %v1185_v2 = vadd.f32 1.0, %v1550_v58 }
 0x563   :  { %1553 = vrcp.f32 %v1166_v1  ;;  %v1178_v31 = vand.u32 2147483648, %v1166_v1  ;;  %v1176_v61 = vand.u32 2147483647, %v1166_v1  ;;  %vm1172_vm6 = vweird.f32 %v1166_v1 }
 0x564   :  { %1555 = vrcp.f32 %v1185_v2  ;;  %v1144_v6 = vpop.f32.mrf.mxu2  ;;  %v1157_v9 = vpop.f32.mrf.mxu3  ;;  %v1197_v56 = vand.u32 2147483648, %v1185_v2  ;;  %v1195_v63 = vand.u32 2147483647, %v1185_v2  ;;  %vm1191_vm7 = vweird.f32 %v1185_v2 }
 0x565   :  { %v1179_v4 = vor.u32 1.1754944e-38, %v1178_v31  ;;  %vm1177_vm10 = vcmp.eq.f32.partialorder %v1176_v61, 8.507059e+37 }
 0x566   :  { %v1198_v11 = vor.u32 1.1754944e-38, %v1197_v56  ;;  %vm1196_vm11 = vcmp.eq.f32.partialorder %v1195_v63, 8.507059e+37 }
 0x567   :  { %v1552_v20 = vpop.eup %1551 }
 0x568   :  { %v1205_v24 = vadd.f32 1.0, %v1552_v20 }
 0x569   :  { %v1554_v25 = vpop.eup %1553 }
 0x56a   :  { %v1556_v37 = vpop.eup %1555  ;;  %v1168_v38 = vmul.f32 %v1554_v25, %v1166_v1  ;;  %1557 = vrcp.f32 %v1205_v24  ;;  %vm1173_vm4 = vweird.f32 %v1554_v25  ;;  %v1217_v52 = vand.u32 2147483648, %v1205_v24 }
 0x56b   :  { %v1187_v39 = vmul.f32 %v1556_v37, %v1185_v2  ;;  %1559 = vtanh.f32 %v1161_v36  ;;  %vm1192_vm5 = vweird.f32 %v1556_v37  ;;  %vm1174_vm8 = vmor %vm1172_vm6, %vm1173_vm4  ;;  %vm1211_vm13 = vweird.f32 %v1205_v24 }
 0x56c   :  { %v1169_v44 = vsub.f32 1.0, %v1168_v38  ;;  %vm1193_vm9 = vmor %vm1191_vm7, %vm1192_vm5  ;;  %v1215_v22 = vand.u32 2147483647, %v1205_v24  ;;  %v1218_v49 = vor.u32 1.1754944e-38, %v1217_v52 }
 0x56d   :  { %v1188_v23 = vsub.f32 1.0, %v1187_v39 }
 0x56e   :  { %v1170_v60 = vmul.f32 %v1554_v25, %v1169_v44  ;;  %vm1216_vm15 = vcmp.eq.f32.partialorder %v1215_v22, 8.507059e+37 }
 0x56f   :  { %v1189_v62 = vmul.f32 %v1556_v37, %v1188_v23 }
 0x570   :  { %v1558_v59 = vpop.eup %1557  ;;  %v1171_v0 = vadd.f32 %v1554_v25, %v1170_v60 }
 0x571   :  { %v1190_v5 = vadd.f32 %v1556_v37, %v1189_v62  ;;  %v1207_v10 = vmul.f32 %v1558_v59, %v1205_v24  ;;  %v1560_v14 = vpop.eup %1559  ;;  %vm1212_vm12 = vweird.f32 %v1558_v59 }
 0x572   :  { %v1175_v13 = vsel %vm1174_vm8, %v1554_v25, %v1171_v0  ;;  %vm1213_vm14 = vmor %vm1211_vm13, %vm1212_vm12 }
 0x573   :  { %v1180_v26 = vsel %vm1177_vm10, %v1179_v4, %v1175_v13  ;;  %v1194_v30 = vsel %vm1193_vm9, %v1556_v37, %v1190_v5  ;;  %v1208_v40 = vsub.f32 1.0, %v1207_v10 }
 0x574   :  { %v1199_v48 = vsel %vm1196_vm11, %v1198_v11, %v1194_v30  ;;  %v1222_v43 = vmul.f32 %v1560_v14, %v1180_v26 }
 0x575   :  { %v1221_v29 = vmul.f32 %v1199_v48, %v2157_v27  ;;  %v1209_v50 = vmul.f32 %v1558_v59, %v1208_v40 }
 0x577   :  { %v1223_v51 = vadd.f32 %v1222_v43, %v1221_v29  ;;  %v1210_v47 = vadd.f32 %v1558_v59, %v1209_v50 }
 0x579   :  { %1561 = vtanh.f32 %v1223_v51  ;;  %v1214_v15 = vsel %vm1213_vm14, %v1558_v59, %v1210_v47 }
 0x57a   :  { %v1219_v3 = vsel %vm1216_vm15, %v1218_v49, %v1214_v15 }
 0x57f   :  { %v1562_v55 = vpop.eup %1561 }
 0x580   :  { %v1225_v18 = vmul.f32 %v1562_v55, %v1219_v3 }
 0x582   :  { %1231 = vst [vmem:[%s2172_s2] sm:$0xff] %v1225_v18 }

</bundles_post_ra>
